<compile_context>
chip_gen: v7x
topology: tpu7x:2x2x1
jax: 0.10.0
libtpu: 0.0.40
codegen_flags: <defaults>
</compile_context>

<pallas_src>
import functools

import jax
import jax.numpy as jnp
from jax import lax
from jax.experimental import pallas as pl
from jax.experimental.pallas import tpu as pltpu


def _shift_lanes(v, s):
    """out[:, j] = v[:, j + s] when the source index is in range, else 0.

    `s` is a static Python int; lowers to a lane rotate + select (no relayout).
    """
    if s == 0:
        return v
    c, m = v.shape
    if s > 0:
        return jnp.concatenate([v[:, s:], jnp.zeros((c, s), v.dtype)], axis=1)
    return jnp.concatenate([jnp.zeros((c, -s), v.dtype), v[:, :m + s]], axis=1)


def _rcab_kernel(x_ref, w1_ref, b1_ref, w2_ref, b2_ref,
                 wd_ref, bd_ref, wu_ref, bu_ref, out_ref,
                 col_scr, *, W):
    # x_ref  : (1, C, H*W) f32  -- one batch element, NCHW with spatial flattened
    # w1/w2  : (C, 9*C) bf16    -- column index = (kh*3 + kw)*C + cin
    # b1/b2  : (C, 1)  f32
    # wd_ref : (C, Cr) f32      -- transposed squeeze (1x1) conv weight
    # bd_ref : (1, Cr) f32
    # wu_ref : (C, Cr) f32      -- excite (1x1) conv weight (torch layout)
    # bu_ref : (C, 1)  f32
    # out_ref: (1, C, H*W) f32
    # col_scr: (9*C, H*W) bf16  -- im2col slab (3x3 taps folded into K);
    #                              fully rewritten every grid step, so there is
    #                              no cross-step/cross-core state ("parallel"
    #                              megacore scheduling is safe).
    _, C, HW = x_ref.shape

    x = x_ref[0]                                      # (C, HW) f32
    x_bf = x.astype(jnp.bfloat16)

    # 0/1 edge masks along the flattened spatial (lane) axis: a tap that looks
    # one pixel left (kw==0) is invalid in the first image column, one pixel
    # right (kw==2) is invalid in the last image column.  Row over/underflow is
    # handled by the zero fill inside _shift_lanes.
    w_idx = lax.broadcasted_iota(jnp.int32, (1, HW), 1) % W
    left_m = (w_idx >= 1).astype(jnp.bfloat16)        # for kw == 0 taps
    right_m = (w_idx <= W - 2).astype(jnp.bfloat16)   # for kw == 2 taps

    def build_cols(v_bf):
        # Tap (kh, kw) of a padding-1 3x3 conv reads pixel (h+kh-1, w+kw-1),
        # i.e. flat lane j + (kh-1)*W + (kw-1).
        for kh in range(3):
            for kw in range(3):
                t = kh * 3 + kw
                shifted = _shift_lanes(v_bf, (kh - 1) * W + (kw - 1))
                if kw == 0:
                    shifted = shifted * left_m
                elif kw == 2:
                    shifted = shifted * right_m
                # Full-width (C, HW) row block at an aligned sublane offset.
                col_scr[t * C:(t + 1) * C, :] = shifted

    # ---- conv1 (3x3, pad=1) + ReLU : one (C,9C)@(9C,HW) bf16 MXU matmul ----
    build_cols(x_bf)
    acc1 = jnp.dot(w1_ref[...], col_scr[...],
                   preferred_element_type=jnp.float32)          # (C, HW) f32
    h1 = jnp.maximum(acc1 + b1_ref[...], 0.0)

    # ---- conv2 (3x3, pad=1) ----
    build_cols(h1.astype(jnp.bfloat16))
    acc2 = jnp.dot(w2_ref[...], col_scr[...],
                   preferred_element_type=jnp.float32)          # (C, HW) f32
    res = acc2 + b2_ref[...]

    # ---- CALayer: global avg pool -> squeeze -> ReLU -> excite -> sigmoid ----
    # Tiny (C x Cr) work, kept in f32; broadcast-mul + reductions only
    # (no N=1 matmuls, no in-kernel transposes).
    pooled = jnp.sum(res, axis=1, keepdims=True) * (1.0 / HW)       # (C, 1)
    y = jnp.sum(wd_ref[...] * pooled, axis=0, keepdims=True) + bd_ref[...]
    y = jnp.maximum(y, 0.0)                                         # (1, Cr)
    y = jnp.sum(wu_ref[...] * y, axis=1, keepdims=True) + bu_ref[...]
    gate = jax.nn.sigmoid(y)                                        # (C, 1)

    # ---- channel gate + residual (exact f32) ----
    out_ref[0] = (res * gate + x).astype(out_ref.dtype)


def _prep_params(params):
    """Torch-layout params -> kernel layouts (host-side glue, done once)."""
    w1, b1, w2, b2, wd, bd, wu, bu = params
    C = w1.shape[0]
    Cr = wd.shape[0]
    # OIHW -> (C_out, kh, kw, C_in) -> (C_out, 9*C_in), cast to bf16 for MXU.
    w1t = jnp.transpose(w1, (0, 2, 3, 1)).reshape(C, 9 * C).astype(jnp.bfloat16)
    w2t = jnp.transpose(w2, (0, 2, 3, 1)).reshape(C, 9 * C).astype(jnp.bfloat16)
    wdT = jnp.transpose(wd[:, :, 0, 0], (1, 0))        # (C, Cr)
    wuC = wu[:, :, 0, 0]                               # (C, Cr)
    return (w1t, b1.reshape(C, 1), w2t, b2.reshape(C, 1),
            wdT, bd.reshape(1, Cr), wuC, bu.reshape(C, 1))


def rcab_pallas_flat(x_flat, prepped, H, W):
    """Core entry point. x_flat: (N, C, H*W) float32 (NCHW, spatial flattened)."""
    w1t, b1, w2t, b2, wdT, bd, wuC, bu = prepped
    N, C, HW = x_flat.shape
    assert HW == H * W
    Cr = wdT.shape[1]

    full = lambda shape: pl.BlockSpec(shape, lambda n, s=shape: (0,) * len(s))

    flops = int(N * (2 * 2 * C * 9 * C * HW + 4 * C * Cr + 2 * C * HW))
    bytes_accessed = int(2 * N * C * HW * 4               # x in + out
                         + 2 * 9 * C * C * 2              # bf16 conv weights
                         + (3 * C + Cr + 2 * C * Cr) * 4)  # biases + CA weights

    kernel = functools.partial(_rcab_kernel, W=W)

    return pl.pallas_call(
        kernel,
        out_shape=jax.ShapeDtypeStruct((N, C, HW), x_flat.dtype),
        grid_spec=pltpu.PrefetchScalarGridSpec(
            num_scalar_prefetch=0,
            grid=(N,),
            in_specs=[
                pl.BlockSpec((1, C, HW), lambda n: (n, 0, 0)),   # x (lane-dense)
                full((C, 9 * C)),        # w1 (bf16)
                full((C, 1)),            # b1
                full((C, 9 * C)),        # w2 (bf16)
                full((C, 1)),            # b2
                full((C, Cr)),           # wd^T
                full((1, Cr)),           # bd
                full((C, Cr)),           # wu
                full((C, 1)),            # bu
            ],
            out_specs=pl.BlockSpec((1, C, HW), lambda n: (n, 0, 0)),
            scratch_shapes=[
                pltpu.VMEM((9 * C, HW), jnp.bfloat16),   # im2col slab (reused)
            ],
        ),
        compiler_params=pltpu.CompilerParams(
            dimension_semantics=("parallel",),
            vmem_limit_bytes=32 * 1024 * 1024),
        cost_estimate=pl.CostEstimate(
            flops=flops, transcendentals=int(N * C),
            bytes_accessed=bytes_accessed),
    )(x_flat, w1t, b1, w2t, b2, wdT, bd, wuC, bu)


def rcab_pallas(x_nchw, params):
    """PyTorch-layout wrapper: (N, C, H, W) float32 -> (N, C, H, W).

    Only free, contiguous reshapes at the boundary -- activations stay NCHW
    throughout (no HBM transpose round trips).  Conv matmul inputs run in
    bf16 on the MXU with f32 accumulation (documented deviation from exact
    f32 PyTorch conv numerics).
    """
    N, C, H, W = x_nchw.shape
    out = rcab_pallas_flat(x_nchw.reshape(N, C, H * W), _prep_params(params), H, W)
    return out.reshape(N, C, H, W)


def rcab_reference(x, params, matmul_dtype=jnp.float32):
    """Pure-JAX reference (PyTorch NCHW / OIHW conventions).

    matmul_dtype controls the precision of the 3x3 conv *inputs* only
    (accumulation always f32), mirroring the kernel's bf16 MXU path.
    """
    w1, b1, w2, b2, wd, bd, wu, bu = params
    dn = ("NCHW", "OIHW", "NCHW")

    def conv3(a, w):
        return lax.conv_general_dilated(
            a.astype(matmul_dtype), w.astype(matmul_dtype), (1, 1),
            [(1, 1), (1, 1)], dimension_numbers=dn,
            preferred_element_type=jnp.float32)

    def conv1_f32(a, w):
        return lax.conv_general_dilated(
            a, w, (1, 1), [(0, 0), (0, 0)], dimension_numbers=dn)

    h = jnp.maximum(conv3(x, w1) + b1[None, :, None, None], 0.0)
    res = conv3(h, w2) + b2[None, :, None, None]
    pooled = jnp.mean(res, axis=(2, 3), keepdims=True)
    y = jnp.maximum(conv1_f32(pooled, wd) + bd[None, :, None, None], 0.0)
    y = jax.nn.sigmoid(conv1_f32(y, wu) + bu[None, :, None, None])
    return res * y + x


def make_params(channel, reduction=16, key=jax.random.PRNGKey(42)):
    Cr = channel // reduction
    ks = jax.random.split(key, 8)
    s = 0.1
    w1 = s * jax.random.normal(ks[0], (channel, channel, 3, 3), jnp.float32)
    b1 = s * jax.random.normal(ks[1], (channel,), jnp.float32)
    w2 = s * jax.random.normal(ks[2], (channel, channel, 3, 3), jnp.float32)
    b2 = s * jax.random.normal(ks[3], (channel,), jnp.float32)
    wd = s * jax.random.normal(ks[4], (Cr, channel, 1, 1), jnp.float32)
    bd = s * jax.random.normal(ks[5], (Cr,), jnp.float32)
    wu = s * jax.random.normal(ks[6], (channel, Cr, 1, 1), jnp.float32)
    bu = s * jax.random.normal(ks[7], (channel,), jnp.float32)
    return (w1, b1, w2, b2, wd, bd, wu, bu)


if __name__ == "__main__":
    N, C, H, W = 2, 32, 16, 16          # channel=32 so channel//16 = 2
    params = make_params(C, reduction=16)
    x = jax.random.normal(jax.random.PRNGKey(0), (N, C, H, W), jnp.float32)

    out = jax.block_until_ready(rcab_pallas(x, params))
    assert out.shape == (N, C, H, W)

    # Tight check vs. a reference that uses the same bf16-input / f32-accumulate
    # conv math -> verifies the kernel implements the intended semantics.
    ref_bf16 = rcab_reference(x, params, matmul_dtype=jnp.bfloat16)
    assert jnp.allclose(out, ref_bf16, atol=5e-3, rtol=5e-3), (
        float(jnp.max(jnp.abs(out - ref_bf16))))

    # Looser check vs. the full-f32 PyTorch-semantics reference (tolerance
    # widened because the conv matmuls run with bf16 inputs on the MXU).
    ref_f32 = rcab_reference(x, params, matmul_dtype=jnp.float32)
    assert jnp.allclose(out, ref_f32, atol=1e-1, rtol=1e-1), (
        float(jnp.max(jnp.abs(out - ref_f32))))

    print("KERNEL_OK")
</pallas_src>

<mosaic_0001>
module attributes {stable_mosaic.version = 11 : i64} {
  func.func @_rcab_kernel(%arg0: i32, %arg1: memref<1x32x256xf32, #tpu.memory_space<vmem>>, %arg2: memref<32x288xbf16, #tpu.memory_space<vmem>>, %arg3: memref<32x1xf32, #tpu.memory_space<vmem>>, %arg4: memref<32x288xbf16, #tpu.memory_space<vmem>>, %arg5: memref<32x1xf32, #tpu.memory_space<vmem>>, %arg6: memref<32x2xf32, #tpu.memory_space<vmem>>, %arg7: memref<1x2xf32, #tpu.memory_space<vmem>>, %arg8: memref<32x2xf32, #tpu.memory_space<vmem>>, %arg9: memref<32x1xf32, #tpu.memory_space<vmem>>, %arg10: memref<1x32x256xf32, #tpu.memory_space<vmem>>, %arg11: memref<288x256xbf16, #tpu.memory_space<vmem>>) attributes {dimension_semantics = [#tpu.dimension_semantics<parallel>], iteration_bounds = array<i64: 2>, scalar_prefetch = 0 : i64, scratch_operands = 1 : i64, tpu.core_type = #tpu.core_type<tc>, window_params = [{transform_indices = @transform_0, window_bounds = array<i64: 1, 32, 256>}, {pipeline_mode = #tpu.pipeline_mode<synchronous>, transform_indices = @transform_1, window_bounds = array<i64: 32, 288>}, {pipeline_mode = #tpu.pipeline_mode<synchronous>, transform_indices = @transform_2, window_bounds = array<i64: 32, 1>}, {pipeline_mode = #tpu.pipeline_mode<synchronous>, transform_indices = @transform_3, window_bounds = array<i64: 32, 288>}, {pipeline_mode = #tpu.pipeline_mode<synchronous>, transform_indices = @transform_4, window_bounds = array<i64: 32, 1>}, {pipeline_mode = #tpu.pipeline_mode<synchronous>, transform_indices = @transform_5, window_bounds = array<i64: 32, 2>}, {pipeline_mode = #tpu.pipeline_mode<synchronous>, transform_indices = @transform_6, window_bounds = array<i64: 1, 2>}, {pipeline_mode = #tpu.pipeline_mode<synchronous>, transform_indices = @transform_7, window_bounds = array<i64: 32, 2>}, {pipeline_mode = #tpu.pipeline_mode<synchronous>, transform_indices = @transform_8, window_bounds = array<i64: 32, 1>}, {transform_indices = @transform_9, window_bounds = array<i64: 1, 32, 256>}]} {
    %c0 = arith.constant 0 : index
    %c0_0 = arith.constant 0 : index
    %c0_1 = arith.constant 0 : index
    %0 = vector.load %arg1[%c0, %c0_0, %c0_1] : memref<1x32x256xf32, #tpu.memory_space<vmem>>, vector<1x32x256xf32>
    %1 = vector.shape_cast %0 : vector<1x32x256xf32> to vector<32x256xf32>
    %2 = arith.truncf %1 : vector<32x256xf32> to vector<32x256xbf16>
    %3 = tpu.iota {dimensions = array<i32: 1>} : vector<1x256xi32>
    %c16_i32 = arith.constant 16 : i32
    %c0_i32 = arith.constant 0 : i32
    %4 = arith.cmpi eq, %c16_i32, %c0_i32 : i32
    %c1_i32 = arith.constant 1 : i32
    %5 = arith.select %4, %c1_i32, %c16_i32 : i32
    %6 = vector.broadcast %5 : i32 to vector<1x256xi32>
    %7 = arith.remsi %3, %6 : vector<1x256xi32>
    %c0_i32_2 = arith.constant 0 : i32
    %8 = vector.broadcast %c0_i32_2 : i32 to vector<1x256xi32>
    %9 = arith.cmpi ne, %7, %8 : vector<1x256xi32>
    %c0_i32_3 = arith.constant 0 : i32
    %10 = vector.broadcast %c0_i32_3 : i32 to vector<1x256xi32>
    %11 = arith.cmpi slt, %7, %10 : vector<1x256xi32>
    %c0_i32_4 = arith.constant 0 : i32
    %12 = arith.cmpi slt, %5, %c0_i32_4 : i32
    %13 = vector.broadcast %12 : i1 to vector<1x256xi1>
    %14 = vector.broadcast %13 : vector<1x256xi1> to vector<1x256xi1>
    %15 = arith.xori %11, %14 : vector<1x256xi1>
    %16 = arith.andi %15, %9 : vector<1x256xi1>
    %17 = vector.broadcast %5 : i32 to vector<1x256xi32>
    %18 = arith.addi %7, %17 : vector<1x256xi32>
    %19 = arith.select %16, %18, %7 : vector<1x256xi1>, vector<1x256xi32>
    %c1_i32_5 = arith.constant 1 : i32
    %20 = vector.broadcast %c1_i32_5 : i32 to vector<1x256xi32>
    %21 = arith.cmpi sge, %19, %20 : vector<1x256xi32>
    %22 = arith.extui %21 : vector<1x256xi1> to vector<1x256xi32>
    %23 = arith.sitofp %22 : vector<1x256xi32> to vector<1x256xf32>
    %24 = arith.truncf %23 : vector<1x256xf32> to vector<1x256xbf16>
    %c14_i32 = arith.constant 14 : i32
    %25 = vector.broadcast %c14_i32 : i32 to vector<1x256xi32>
    %26 = arith.cmpi sle, %19, %25 : vector<1x256xi32>
    %27 = arith.extui %26 : vector<1x256xi1> to vector<1x256xi32>
    %28 = arith.sitofp %27 : vector<1x256xi32> to vector<1x256xf32>
    %29 = arith.truncf %28 : vector<1x256xf32> to vector<1x256xbf16>
    %cst = arith.constant 0.000000e+00 : bf16
    %30 = vector.broadcast %cst : bf16 to vector<32x17xbf16>
    %31 = vector.extract_strided_slice %2 {offsets = [0, 0], sizes = [32, 239], strides = [1, 1]} : vector<32x256xbf16> to vector<32x239xbf16>
    %32 = tpu.concatenate %30, %31 in 1 : vector<32x17xbf16>, vector<32x239xbf16> -> vector<32x256xbf16>
    %33 = vector.broadcast %24 : vector<1x256xbf16> to vector<32x256xbf16>
    %34 = arith.mulf %32, %33 : vector<32x256xbf16>
    %c0_6 = arith.constant 0 : index
    %c0_7 = arith.constant 0 : index
    %35 = vector.load %arg11[%c0_6, %c0_7] : memref<288x256xbf16, #tpu.memory_space<vmem>>, vector<32x256xbf16>
    tpu.vector_store %arg11[%c0_6, %c0_7], %34 {strides = array<i32>} : memref<288x256xbf16, #tpu.memory_space<vmem>>, vector<32x256xbf16>,
    %cst_8 = arith.constant 0.000000e+00 : bf16
    %36 = vector.broadcast %cst_8 : bf16 to vector<32x16xbf16>
    %37 = vector.extract_strided_slice %2 {offsets = [0, 0], sizes = [32, 240], strides = [1, 1]} : vector<32x256xbf16> to vector<32x240xbf16>
    %38 = tpu.concatenate %36, %37 in 1 : vector<32x16xbf16>, vector<32x240xbf16> -> vector<32x256xbf16>
    %c32 = arith.constant 32 : index
    %c0_9 = arith.constant 0 : index
    %39 = vector.load %arg11[%c32, %c0_9] : memref<288x256xbf16, #tpu.memory_space<vmem>>, vector<32x256xbf16>
    tpu.vector_store %arg11[%c32, %c0_9], %38 {strides = array<i32>} : memref<288x256xbf16, #tpu.memory_space<vmem>>, vector<32x256xbf16>,
    %cst_10 = arith.constant 0.000000e+00 : bf16
    %40 = vector.broadcast %cst_10 : bf16 to vector<32x15xbf16>
    %41 = vector.extract_strided_slice %2 {offsets = [0, 0], sizes = [32, 241], strides = [1, 1]} : vector<32x256xbf16> to vector<32x241xbf16>
    %42 = tpu.concatenate %40, %41 in 1 : vector<32x15xbf16>, vector<32x241xbf16> -> vector<32x256xbf16>
    %43 = vector.broadcast %29 : vector<1x256xbf16> to vector<32x256xbf16>
    %44 = arith.mulf %42, %43 : vector<32x256xbf16>
    %c64 = arith.constant 64 : index
    %c0_11 = arith.constant 0 : index
    %45 = vector.load %arg11[%c64, %c0_11] : memref<288x256xbf16, #tpu.memory_space<vmem>>, vector<32x256xbf16>
    tpu.vector_store %arg11[%c64, %c0_11], %44 {strides = array<i32>} : memref<288x256xbf16, #tpu.memory_space<vmem>>, vector<32x256xbf16>,
    %cst_12 = arith.constant 0.000000e+00 : bf16
    %46 = vector.broadcast %cst_12 : bf16 to vector<32x1xbf16>
    %47 = vector.extract_strided_slice %2 {offsets = [0, 0], sizes = [32, 255], strides = [1, 1]} : vector<32x256xbf16> to vector<32x255xbf16>
    %48 = tpu.concatenate %46, %47 in 1 : vector<32x1xbf16>, vector<32x255xbf16> -> vector<32x256xbf16>
    %49 = vector.broadcast %24 : vector<1x256xbf16> to vector<32x256xbf16>
    %50 = arith.mulf %48, %49 : vector<32x256xbf16>
    %c96 = arith.constant 96 : index
    %c0_13 = arith.constant 0 : index
    %51 = vector.load %arg11[%c96, %c0_13] : memref<288x256xbf16, #tpu.memory_space<vmem>>, vector<32x256xbf16>
    tpu.vector_store %arg11[%c96, %c0_13], %50 {strides = array<i32>} : memref<288x256xbf16, #tpu.memory_space<vmem>>, vector<32x256xbf16>,
    %c128 = arith.constant 128 : index
    %c0_14 = arith.constant 0 : index
    %52 = vector.load %arg11[%c128, %c0_14] : memref<288x256xbf16, #tpu.memory_space<vmem>>, vector<32x256xbf16>
    tpu.vector_store %arg11[%c128, %c0_14], %2 {strides = array<i32>} : memref<288x256xbf16, #tpu.memory_space<vmem>>, vector<32x256xbf16>,
    %53 = vector.extract_strided_slice %2 {offsets = [0, 1], sizes = [32, 255], strides = [1, 1]} : vector<32x256xbf16> to vector<32x255xbf16>
    %cst_15 = arith.constant 0.000000e+00 : bf16
    %54 = vector.broadcast %cst_15 : bf16 to vector<32x1xbf16>
    %55 = tpu.concatenate %53, %54 in 1 : vector<32x255xbf16>, vector<32x1xbf16> -> vector<32x256xbf16>
    %56 = vector.broadcast %29 : vector<1x256xbf16> to vector<32x256xbf16>
    %57 = arith.mulf %55, %56 : vector<32x256xbf16>
    %c160 = arith.constant 160 : index
    %c0_16 = arith.constant 0 : index
    %58 = vector.load %arg11[%c160, %c0_16] : memref<288x256xbf16, #tpu.memory_space<vmem>>, vector<32x256xbf16>
    tpu.vector_store %arg11[%c160, %c0_16], %57 {strides = array<i32>} : memref<288x256xbf16, #tpu.memory_space<vmem>>, vector<32x256xbf16>,
    %59 = vector.extract_strided_slice %2 {offsets = [0, 15], sizes = [32, 241], strides = [1, 1]} : vector<32x256xbf16> to vector<32x241xbf16>
    %cst_17 = arith.constant 0.000000e+00 : bf16
    %60 = vector.broadcast %cst_17 : bf16 to vector<32x15xbf16>
    %61 = tpu.concatenate %59, %60 in 1 : vector<32x241xbf16>, vector<32x15xbf16> -> vector<32x256xbf16>
    %62 = vector.broadcast %24 : vector<1x256xbf16> to vector<32x256xbf16>
    %63 = arith.mulf %61, %62 : vector<32x256xbf16>
    %c192 = arith.constant 192 : index
    %c0_18 = arith.constant 0 : index
    %64 = vector.load %arg11[%c192, %c0_18] : memref<288x256xbf16, #tpu.memory_space<vmem>>, vector<32x256xbf16>
    tpu.vector_store %arg11[%c192, %c0_18], %63 {strides = array<i32>} : memref<288x256xbf16, #tpu.memory_space<vmem>>, vector<32x256xbf16>,
    %65 = vector.extract_strided_slice %2 {offsets = [0, 16], sizes = [32, 240], strides = [1, 1]} : vector<32x256xbf16> to vector<32x240xbf16>
    %cst_19 = arith.constant 0.000000e+00 : bf16
    %66 = vector.broadcast %cst_19 : bf16 to vector<32x16xbf16>
    %67 = tpu.concatenate %65, %66 in 1 : vector<32x240xbf16>, vector<32x16xbf16> -> vector<32x256xbf16>
    %c224 = arith.constant 224 : index
    %c0_20 = arith.constant 0 : index
    %68 = vector.load %arg11[%c224, %c0_20] : memref<288x256xbf16, #tpu.memory_space<vmem>>, vector<32x256xbf16>
    tpu.vector_store %arg11[%c224, %c0_20], %67 {strides = array<i32>} : memref<288x256xbf16, #tpu.memory_space<vmem>>, vector<32x256xbf16>,
    %69 = vector.extract_strided_slice %2 {offsets = [0, 17], sizes = [32, 239], strides = [1, 1]} : vector<32x256xbf16> to vector<32x239xbf16>
    %cst_21 = arith.constant 0.000000e+00 : bf16
    %70 = vector.broadcast %cst_21 : bf16 to vector<32x17xbf16>
    %71 = tpu.concatenate %69, %70 in 1 : vector<32x239xbf16>, vector<32x17xbf16> -> vector<32x256xbf16>
    %72 = vector.broadcast %29 : vector<1x256xbf16> to vector<32x256xbf16>
    %73 = arith.mulf %71, %72 : vector<32x256xbf16>
    %c256 = arith.constant 256 : index
    %c0_22 = arith.constant 0 : index
    %74 = vector.load %arg11[%c256, %c0_22] : memref<288x256xbf16, #tpu.memory_space<vmem>>, vector<32x256xbf16>
    tpu.vector_store %arg11[%c256, %c0_22], %73 {strides = array<i32>} : memref<288x256xbf16, #tpu.memory_space<vmem>>, vector<32x256xbf16>,
    %c0_23 = arith.constant 0 : index
    %c0_24 = arith.constant 0 : index
    %75 = vector.load %arg2[%c0_23, %c0_24] : memref<32x288xbf16, #tpu.memory_space<vmem>>, vector<32x288xbf16>
    %c0_25 = arith.constant 0 : index
    %c0_26 = arith.constant 0 : index
    %76 = vector.load %arg11[%c0_25, %c0_26] : memref<288x256xbf16, #tpu.memory_space<vmem>>, vector<288x256xbf16>
    %cst_27 = arith.constant dense<0.000000e+00> : vector<32x256xf32>
    %77 = tpu.matmul %75, %76, %cst_27 {dimension_numbers = #tpu.dot_dimension_numbers<[1], [0], [0], [1], [0, 0, 1, 1], [], []>} : vector<32x288xbf16>, vector<288x256xbf16>, vector<32x256xf32> -> vector<32x256xf32>
    %c0_28 = arith.constant 0 : index
    %c0_29 = arith.constant 0 : index
    %78 = vector.load %arg3[%c0_28, %c0_29] : memref<32x1xf32, #tpu.memory_space<vmem>>, vector<32x1xf32>
    %79 = vector.broadcast %78 : vector<32x1xf32> to vector<32x256xf32>
    %80 = arith.addf %77, %79 : vector<32x256xf32>
    %cst_30 = arith.constant 0.000000e+00 : f32
    %81 = vector.broadcast %cst_30 : f32 to vector<32x256xf32>
    %82 = arith.maximumf %80, %81 : vector<32x256xf32>
    %83 = arith.truncf %82 : vector<32x256xf32> to vector<32x256xbf16>
    %cst_31 = arith.constant 0.000000e+00 : bf16
    %84 = vector.broadcast %cst_31 : bf16 to vector<32x17xbf16>
    %85 = vector.extract_strided_slice %83 {offsets = [0, 0], sizes = [32, 239], strides = [1, 1]} : vector<32x256xbf16> to vector<32x239xbf16>
    %86 = tpu.concatenate %84, %85 in 1 : vector<32x17xbf16>, vector<32x239xbf16> -> vector<32x256xbf16>
    %87 = vector.broadcast %24 : vector<1x256xbf16> to vector<32x256xbf16>
    %88 = arith.mulf %86, %87 : vector<32x256xbf16>
    %c0_32 = arith.constant 0 : index
    %c0_33 = arith.constant 0 : index
    %89 = vector.load %arg11[%c0_32, %c0_33] : memref<288x256xbf16, #tpu.memory_space<vmem>>, vector<32x256xbf16>
    tpu.vector_store %arg11[%c0_32, %c0_33], %88 {strides = array<i32>} : memref<288x256xbf16, #tpu.memory_space<vmem>>, vector<32x256xbf16>,
    %cst_34 = arith.constant 0.000000e+00 : bf16
    %90 = vector.broadcast %cst_34 : bf16 to vector<32x16xbf16>
    %91 = vector.extract_strided_slice %83 {offsets = [0, 0], sizes = [32, 240], strides = [1, 1]} : vector<32x256xbf16> to vector<32x240xbf16>
    %92 = tpu.concatenate %90, %91 in 1 : vector<32x16xbf16>, vector<32x240xbf16> -> vector<32x256xbf16>
    %c32_35 = arith.constant 32 : index
    %c0_36 = arith.constant 0 : index
    %93 = vector.load %arg11[%c32_35, %c0_36] : memref<288x256xbf16, #tpu.memory_space<vmem>>, vector<32x256xbf16>
    tpu.vector_store %arg11[%c32_35, %c0_36], %92 {strides = array<i32>} : memref<288x256xbf16, #tpu.memory_space<vmem>>, vector<32x256xbf16>,
    %cst_37 = arith.constant 0.000000e+00 : bf16
    %94 = vector.broadcast %cst_37 : bf16 to vector<32x15xbf16>
    %95 = vector.extract_strided_slice %83 {offsets = [0, 0], sizes = [32, 241], strides = [1, 1]} : vector<32x256xbf16> to vector<32x241xbf16>
    %96 = tpu.concatenate %94, %95 in 1 : vector<32x15xbf16>, vector<32x241xbf16> -> vector<32x256xbf16>
    %97 = vector.broadcast %29 : vector<1x256xbf16> to vector<32x256xbf16>
    %98 = arith.mulf %96, %97 : vector<32x256xbf16>
    %c64_38 = arith.constant 64 : index
    %c0_39 = arith.constant 0 : index
    %99 = vector.load %arg11[%c64_38, %c0_39] : memref<288x256xbf16, #tpu.memory_space<vmem>>, vector<32x256xbf16>
    tpu.vector_store %arg11[%c64_38, %c0_39], %98 {strides = array<i32>} : memref<288x256xbf16, #tpu.memory_space<vmem>>, vector<32x256xbf16>,
    %cst_40 = arith.constant 0.000000e+00 : bf16
    %100 = vector.broadcast %cst_40 : bf16 to vector<32x1xbf16>
    %101 = vector.extract_strided_slice %83 {offsets = [0, 0], sizes = [32, 255], strides = [1, 1]} : vector<32x256xbf16> to vector<32x255xbf16>
    %102 = tpu.concatenate %100, %101 in 1 : vector<32x1xbf16>, vector<32x255xbf16> -> vector<32x256xbf16>
    %103 = vector.broadcast %24 : vector<1x256xbf16> to vector<32x256xbf16>
    %104 = arith.mulf %102, %103 : vector<32x256xbf16>
    %c96_41 = arith.constant 96 : index
    %c0_42 = arith.constant 0 : index
    %105 = vector.load %arg11[%c96_41, %c0_42] : memref<288x256xbf16, #tpu.memory_space<vmem>>, vector<32x256xbf16>
    tpu.vector_store %arg11[%c96_41, %c0_42], %104 {strides = array<i32>} : memref<288x256xbf16, #tpu.memory_space<vmem>>, vector<32x256xbf16>,
    %c128_43 = arith.constant 128 : index
    %c0_44 = arith.constant 0 : index
    %106 = vector.load %arg11[%c128_43, %c0_44] : memref<288x256xbf16, #tpu.memory_space<vmem>>, vector<32x256xbf16>
    tpu.vector_store %arg11[%c128_43, %c0_44], %83 {strides = array<i32>} : memref<288x256xbf16, #tpu.memory_space<vmem>>, vector<32x256xbf16>,
    %107 = vector.extract_strided_slice %83 {offsets = [0, 1], sizes = [32, 255], strides = [1, 1]} : vector<32x256xbf16> to vector<32x255xbf16>
    %cst_45 = arith.constant 0.000000e+00 : bf16
    %108 = vector.broadcast %cst_45 : bf16 to vector<32x1xbf16>
    %109 = tpu.concatenate %107, %108 in 1 : vector<32x255xbf16>, vector<32x1xbf16> -> vector<32x256xbf16>
    %110 = vector.broadcast %29 : vector<1x256xbf16> to vector<32x256xbf16>
    %111 = arith.mulf %109, %110 : vector<32x256xbf16>
    %c160_46 = arith.constant 160 : index
    %c0_47 = arith.constant 0 : index
    %112 = vector.load %arg11[%c160_46, %c0_47] : memref<288x256xbf16, #tpu.memory_space<vmem>>, vector<32x256xbf16>
    tpu.vector_store %arg11[%c160_46, %c0_47], %111 {strides = array<i32>} : memref<288x256xbf16, #tpu.memory_space<vmem>>, vector<32x256xbf16>,
    %113 = vector.extract_strided_slice %83 {offsets = [0, 15], sizes = [32, 241], strides = [1, 1]} : vector<32x256xbf16> to vector<32x241xbf16>
    %cst_48 = arith.constant 0.000000e+00 : bf16
    %114 = vector.broadcast %cst_48 : bf16 to vector<32x15xbf16>
    %115 = tpu.concatenate %113, %114 in 1 : vector<32x241xbf16>, vector<32x15xbf16> -> vector<32x256xbf16>
    %116 = vector.broadcast %24 : vector<1x256xbf16> to vector<32x256xbf16>
    %117 = arith.mulf %115, %116 : vector<32x256xbf16>
    %c192_49 = arith.constant 192 : index
    %c0_50 = arith.constant 0 : index
    %118 = vector.load %arg11[%c192_49, %c0_50] : memref<288x256xbf16, #tpu.memory_space<vmem>>, vector<32x256xbf16>
    tpu.vector_store %arg11[%c192_49, %c0_50], %117 {strides = array<i32>} : memref<288x256xbf16, #tpu.memory_space<vmem>>, vector<32x256xbf16>,
    %119 = vector.extract_strided_slice %83 {offsets = [0, 16], sizes = [32, 240], strides = [1, 1]} : vector<32x256xbf16> to vector<32x240xbf16>
    %cst_51 = arith.constant 0.000000e+00 : bf16
    %120 = vector.broadcast %cst_51 : bf16 to vector<32x16xbf16>
    %121 = tpu.concatenate %119, %120 in 1 : vector<32x240xbf16>, vector<32x16xbf16> -> vector<32x256xbf16>
    %c224_52 = arith.constant 224 : index
    %c0_53 = arith.constant 0 : index
    %122 = vector.load %arg11[%c224_52, %c0_53] : memref<288x256xbf16, #tpu.memory_space<vmem>>, vector<32x256xbf16>
    tpu.vector_store %arg11[%c224_52, %c0_53], %121 {strides = array<i32>} : memref<288x256xbf16, #tpu.memory_space<vmem>>, vector<32x256xbf16>,
    %123 = vector.extract_strided_slice %83 {offsets = [0, 17], sizes = [32, 239], strides = [1, 1]} : vector<32x256xbf16> to vector<32x239xbf16>
    %cst_54 = arith.constant 0.000000e+00 : bf16
    %124 = vector.broadcast %cst_54 : bf16 to vector<32x17xbf16>
    %125 = tpu.concatenate %123, %124 in 1 : vector<32x239xbf16>, vector<32x17xbf16> -> vector<32x256xbf16>
    %126 = vector.broadcast %29 : vector<1x256xbf16> to vector<32x256xbf16>
    %127 = arith.mulf %125, %126 : vector<32x256xbf16>
    %c256_55 = arith.constant 256 : index
    %c0_56 = arith.constant 0 : index
    %128 = vector.load %arg11[%c256_55, %c0_56] : memref<288x256xbf16, #tpu.memory_space<vmem>>, vector<32x256xbf16>
    tpu.vector_store %arg11[%c256_55, %c0_56], %127 {strides = array<i32>} : memref<288x256xbf16, #tpu.memory_space<vmem>>, vector<32x256xbf16>,
    %c0_57 = arith.constant 0 : index
    %c0_58 = arith.constant 0 : index
    %129 = vector.load %arg4[%c0_57, %c0_58] : memref<32x288xbf16, #tpu.memory_space<vmem>>, vector<32x288xbf16>
    %c0_59 = arith.constant 0 : index
    %c0_60 = arith.constant 0 : index
    %130 = vector.load %arg11[%c0_59, %c0_60] : memref<288x256xbf16, #tpu.memory_space<vmem>>, vector<288x256xbf16>
    %cst_61 = arith.constant dense<0.000000e+00> : vector<32x256xf32>
    %131 = tpu.matmul %129, %130, %cst_61 {dimension_numbers = #tpu.dot_dimension_numbers<[1], [0], [0], [1], [0, 0, 1, 1], [], []>} : vector<32x288xbf16>, vector<288x256xbf16>, vector<32x256xf32> -> vector<32x256xf32>
    %c0_62 = arith.constant 0 : index
    %c0_63 = arith.constant 0 : index
    %132 = vector.load %arg5[%c0_62, %c0_63] : memref<32x1xf32, #tpu.memory_space<vmem>>, vector<32x1xf32>
    %133 = vector.broadcast %132 : vector<32x1xf32> to vector<32x256xf32>
    %134 = arith.addf %131, %133 : vector<32x256xf32>
    %cst_64 = arith.constant dense<0.000000e+00> : vector<32xf32>
    %135 = vector.multi_reduction <add>, %134, %cst_64 [1] : vector<32x256xf32> to vector<32xf32>
    %136 = vector.shape_cast %135 : vector<32xf32> to vector<32x1xf32>
    %cst_65 = arith.constant 3.906250e-03 : f32
    %137 = vector.broadcast %cst_65 : f32 to vector<32x1xf32>
    %138 = arith.mulf %136, %137 : vector<32x1xf32>
    %c0_66 = arith.constant 0 : index
    %c0_67 = arith.constant 0 : index
    %139 = vector.load %arg6[%c0_66, %c0_67] : memref<32x2xf32, #tpu.memory_space<vmem>>, vector<32x2xf32>
    %140 = vector.broadcast %138 : vector<32x1xf32> to vector<32x2xf32>
    %141 = arith.mulf %139, %140 : vector<32x2xf32>
    %cst_68 = arith.constant dense<0.000000e+00> : vector<2xf32>
    %142 = vector.multi_reduction <add>, %141, %cst_68 [0] : vector<32x2xf32> to vector<2xf32>
    %143 = vector.shape_cast %142 : vector<2xf32> to vector<1x2xf32>
    %c0_69 = arith.constant 0 : index
    %c0_70 = arith.constant 0 : index
    %144 = vector.load %arg7[%c0_69, %c0_70] : memref<1x2xf32, #tpu.memory_space<vmem>>, vector<1x2xf32>
    %145 = arith.addf %143, %144 : vector<1x2xf32>
    %cst_71 = arith.constant 0.000000e+00 : f32
    %146 = vector.broadcast %cst_71 : f32 to vector<1x2xf32>
    %147 = arith.maximumf %145, %146 : vector<1x2xf32>
    %c0_72 = arith.constant 0 : index
    %c0_73 = arith.constant 0 : index
    %148 = vector.load %arg8[%c0_72, %c0_73] : memref<32x2xf32, #tpu.memory_space<vmem>>, vector<32x2xf32>
    %149 = vector.broadcast %147 : vector<1x2xf32> to vector<32x2xf32>
    %150 = arith.mulf %148, %149 : vector<32x2xf32>
    %cst_74 = arith.constant dense<0.000000e+00> : vector<32xf32>
    %151 = vector.multi_reduction <add>, %150, %cst_74 [1] : vector<32x2xf32> to vector<32xf32>
    %152 = vector.shape_cast %151 : vector<32xf32> to vector<32x1xf32>
    %c0_75 = arith.constant 0 : index
    %c0_76 = arith.constant 0 : index
    %153 = vector.load %arg9[%c0_75, %c0_76] : memref<32x1xf32, #tpu.memory_space<vmem>>, vector<32x1xf32>
    %154 = arith.addf %152, %153 : vector<32x1xf32>
    %155 = arith.negf %154 : vector<32x1xf32>
    %156 = math.exp %155 : vector<32x1xf32>
    %cst_77 = arith.constant 1.000000e+00 : f32
    %157 = vector.broadcast %cst_77 : f32 to vector<32x1xf32>
    %158 = arith.addf %157, %156 : vector<32x1xf32>
    %159 = arith.divf %157, %158 : vector<32x1xf32>
    %160 = vector.broadcast %159 : vector<32x1xf32> to vector<32x256xf32>
    %161 = arith.mulf %134, %160 : vector<32x256xf32>
    %162 = arith.addf %161, %1 : vector<32x256xf32>
    %c0_78 = arith.constant 0 : index
    %c0_79 = arith.constant 0 : index
    %c0_80 = arith.constant 0 : index
    %163 = vector.load %arg10[%c0_78, %c0_79, %c0_80] : memref<1x32x256xf32, #tpu.memory_space<vmem>>, vector<1x32x256xf32>
    %164 = vector.shape_cast %163 : vector<1x32x256xf32> to vector<32x256xf32>
    %165 = vector.shape_cast %162 : vector<32x256xf32> to vector<1x32x256xf32>
    tpu.vector_store %arg10[%c0_78, %c0_79, %c0_80], %165 {strides = array<i32>} : memref<1x32x256xf32, #tpu.memory_space<vmem>>, vector<1x32x256xf32>,
    return
  }
  func.func @transform_0(%arg0: i32) -> (i32, i32, i32) {
    %c0_i32 = arith.constant 0 : i32
    %c0_i32_0 = arith.constant 0 : i32
    %c0_i32_1 = arith.constant 0 : i32
    return %arg0, %c0_i32, %c0_i32_0 : i32, i32, i32
  }
  func.func @transform_1(%arg0: i32) -> (i32, i32) {
    %c0_i32 = arith.constant 0 : i32
    %c0_i32_0 = arith.constant 0 : i32
    %c0_i32_1 = arith.constant 0 : i32
    return %c0_i32, %c0_i32_0 : i32, i32
  }
  func.func @transform_2(%arg0: i32) -> (i32, i32) {
    %c0_i32 = arith.constant 0 : i32
    %c0_i32_0 = arith.constant 0 : i32
    %c0_i32_1 = arith.constant 0 : i32
    return %c0_i32, %c0_i32_0 : i32, i32
  }
  func.func @transform_3(%arg0: i32) -> (i32, i32) {
    %c0_i32 = arith.constant 0 : i32
    %c0_i32_0 = arith.constant 0 : i32
    %c0_i32_1 = arith.constant 0 : i32
    return %c0_i32, %c0_i32_0 : i32, i32
  }
  func.func @transform_4(%arg0: i32) -> (i32, i32) {
    %c0_i32 = arith.constant 0 : i32
    %c0_i32_0 = arith.constant 0 : i32
    %c0_i32_1 = arith.constant 0 : i32
    return %c0_i32, %c0_i32_0 : i32, i32
  }
  func.func @transform_5(%arg0: i32) -> (i32, i32) {
    %c0_i32 = arith.constant 0 : i32
    %c0_i32_0 = arith.constant 0 : i32
    %c0_i32_1 = arith.constant 0 : i32
    return %c0_i32, %c0_i32_0 : i32, i32
  }
  func.func @transform_6(%arg0: i32) -> (i32, i32) {
    %c0_i32 = arith.constant 0 : i32
    %c0_i32_0 = arith.constant 0 : i32
    %c0_i32_1 = arith.constant 0 : i32
    return %c0_i32, %c0_i32_0 : i32, i32
  }
  func.func @transform_7(%arg0: i32) -> (i32, i32) {
    %c0_i32 = arith.constant 0 : i32
    %c0_i32_0 = arith.constant 0 : i32
    %c0_i32_1 = arith.constant 0 : i32
    return %c0_i32, %c0_i32_0 : i32, i32
  }
  func.func @transform_8(%arg0: i32) -> (i32, i32) {
    %c0_i32 = arith.constant 0 : i32
    %c0_i32_0 = arith.constant 0 : i32
    %c0_i32_1 = arith.constant 0 : i32
    return %c0_i32, %c0_i32_0 : i32, i32
  }
  func.func @transform_9(%arg0: i32) -> (i32, i32, i32) {
    %c0_i32 = arith.constant 0 : i32
    %c0_i32_0 = arith.constant 0 : i32
    %c0_i32_1 = arith.constant 0 : i32
    return %arg0, %c0_i32, %c0_i32_0 : i32, i32, i32
  }
}

</mosaic_0001>

<bundles_post_ra>
// kernel: tpu_custom_call.1
= control target key start
LH: loop header
LB: loop body
LE: loop exit
PB: predicated region body
PF: predicated region fallthrough
CT: control target
= control target key end

     0   :  { %14 = vsyncpa [#allocation4], 0  ;;  %s2422_s0 = inlined_call_operand.vmem [shape: f32[2,32,256], index: 0, kind: input, shape index: {}]   ;;  %s2423_s1 = inlined_call_operand.hbm [shape: bf16[32,288], index: 1, kind: input, shape index: {}]   ;;  %s2424_s2 = inlined_call_operand.vmem [shape: f32[32,1], index: 2, kind: input, shape index: {}]   ;;  %s2425_s3 = inlined_call_operand.vmem [shape: bf16[32,288], index: 3, kind: input, shape index: {}]   ;;  %s2426_s4 = inlined_call_operand.vmem [shape: f32[32,1], index: 4, kind: input, shape index: {}]   ;;  %s2427_s5 = inlined_call_operand.vmem [shape: f32[32,2], index: 5, kind: input, shape index: {}]   ;;  %s2428_s6 = inlined_call_operand.vmem [shape: f32[1,2], index: 6, kind: input, shape index: {}]   ;;  %s2429_s7 = inlined_call_operand.vmem [shape: f32[32,2], index: 7, kind: input, shape index: {}]   ;;  %s2430_s8 = inlined_call_operand.vmem [shape: f32[32,1], index: 8, kind: input, shape index: {}]   ;;  %s2431_s9 = inlined_call_operand.hbm [shape: f32[2,32,256], index: 9, kind: output, shape index: {}]  }
   0x1   :  { %15 = vsyncpa [#allocation5], 0 }
   0x2   :  { %17 = vsyncpa [#allocation5 + $0x1], 0  ;;  %s1847_s30 = smov 0   ;;  %s1849_s10 = smov 0  }
   0x3   :  { %s1851_s11 = smov 0   ;;  %s1853_s12 = smov 0  }
   0x4 LB: > { %s1868_s13 = sadd.s32 4294967295, %s1780_s12   ;;  %s1497_s14 = sadd.s32 4294967294, %s1780_s12   ;;  %s1780_s12 = sphi %s1853_s12, %s2464_s12   ;;  %s1776_s11 = sphi %s1851_s11, %s2463_s11   ;;  %s1772_s10 = sphi %s1849_s10, %s2462_s10   ;;  %s1768_s30 = sphi %s1847_s30, %s2461_s30  }
   0x5   : > { %s1872_s15 = sadd.s32 1, %s1780_s12   ;;  %s224_s16 = sadd.s32 1, %s1776_s11 }
   0x6   : > { %s221_s17 = ssub.s32 %s1780_s12, %s1872_s15  ;;  %p234_p0 = scmp.ne.s32.totalorder %s1776_s11, %s1772_s10 }
   0x7   : > { %p222_p1 = scmp.eq.s32.totalorder %s221_s17, 0  ;;  %p235_p2 = scmp.eq.s32.totalorder %s1868_s13, 1 }
   0x8   : > { %p240_p3 = scmp.ne.s32.totalorder %s1772_s10, %s1768_s30  ;;  %p241_p4 = scmp.eq.s32.totalorder %s1497_s14, 1 }
   0x9   : > { %s1883_s18 = scalar_select %p222_p1, %s1776_s11, %s224_s16  }
   0xa   : > { %p1885_p5 = por %p235_p2, %p234_p0  ;;  %p1889_p6 = por %p241_p4, %p240_p3 }
   0xb   : > { %p1498_p7 = scmp.ge.s32.totalorder %s1780_s12, 1  ;;  %p248_p8 = scmp.lt.s32.totalorder %s1780_s12, 3 }
   0xc   : > { %s2445_s19 = scalar_select %p1885_p5, 1, 0 }
   0xd   : > { %s2446_s20 = scalar_select %p1889_p6, 1, 0 }
   0xe   : > { %p2432_p9 = scmp.eq.s32.totalorder %s1868_s13, 0  ;;  %p1896_p10 = pnand %p1498_p7, %p248_p8 }
   0xf   : > { %s1782_s22 = smov [#allocation3]   ;;  %s1686_s27 = scalar_lea.hbm %s2423_s1, 768 }
  0x10   : > { %s2447_s21 = scalar_select %p1896_p10, 1, 0 }
  0x11   : > { %s260_s23 = sshll.u32 %s1782_s22, 4  ;;  %p1587_p11 = pneg %p1896_p10  ;;  %s261_s23 = int_to_ptr.vmem [resolvable:$true] %s260_s23 }
  0x12   : > { %p1687_p13 = scmp.ne.s32.totalorder %s2423_s1, %s1686_s27  ;;  %p1693_p3 = scmp.lt.u32.totalorder %s1686_s27, %s2423_s1 }
  0x13   : > { %p1904_p12 = pnand %p2432_p9, %p1587_p11 }
  0x15   : > { %p1688_p0 = pneg %p1904_p12 }
  0x17   : > { %p1689_p1 = pnand %p1688_p0, %p1687_p13 }
  0x19   : > { %p1690_p2 = pneg %p1689_p1 }
  0x1b   : > { %p1695_p4 = pnand %p1693_p3, %p1690_p2 }
  0x1d   : > { %1698 = shalt.err (!%p1695_p4)
}
  0x1e   : > { %s1699_s17 = scalar_lea.vmem %s261_s23, 768  ;;  %p1707_p9 = scmp.lt.s32.totalorder %s261_s23, %s261_s23 }
  0x1f   : > { %p1700_p7 = scmp.ne.s32.totalorder %s261_s23, %s1699_s17  ;;  %p1708_p6 = scmp.lt.s32.totalorder %s1699_s17, %s1699_s17 }
  0x21   : > { %p1702_p8 = pnand %p1700_p7, %p1688_p0  ;;  %p1709_p5 = por %p1708_p6, %p1707_p9 }
  0x23   : > { %p1703_p11 = pneg %p1702_p8 }
  0x25   : > { %p1710_p10 = pnand %p1709_p5, %p1703_p11 }
  0x27   : > { %1713 = shalt.err (!%p1710_p10)
}
  0x28   : > { %s1783_s22 = smov 192   ;;  %s1784_s25 = smov 12  }
  0x29   : > { %1590 = dma.hbm_to_vmem [thread:$0]  (!%p1904_p12), %s2423_s1, 768, %s261_s23, [#allocation4], %s1783_s22, %s1783_s22, %s1784_s25  }
  0x2a   : > { %p2449_p13 = scmp.ne.s32.totalorder %s2447_s21, 0 }
  0x2b   : > { %p2450_p1 = scmp.eq.s32.totalorder (!%p2449_p13), %s1868_s13, 0 }
  0x2c   : > { %305 = sbr.rel (%p2449_p13) target bundleno = 1409 (0x581), region = 56 }
  0x33   : > { %1759 = dma.done.wait (%p2450_p1), [#allocation4], 768   ;;  %p2451_p0 = pmov %p2450_p1 }
  0x34   : > { %p341_p5 = scmp.lt.s32.totalorder %s1868_s13, 1  ;;  %s1785_s21 = smov 17   ;;  %v1648_v12 = vld [vmem:[#allocation3 + $0x4] ss:$12 sps:$4 sm:$0xff]   ;;  %v1793_v13 = vmov 0   ;;  %v672_v15 = vld [vmem:[%s2424_s2 + $0x8] sm:$0xff]  ;;  %v359_v18 = vlaneseq }
  0x35   : > { %1761 = vsyncadd (%p2451_p0), [#allocation4], 4294966528  ;;  %s1786_s23 = smov 16   ;;  %s1787_s17 = smov 15   ;;  %764 = vmatprep.mubr.bf16.mxu0 %v1648_v12  ;;  %1644 = vset.pattern.permute.xlu0 %v1793_v13  ;;  %v671_v14 = vld [vmem:[%s2424_s2] sm:$0xff]  ;;  %v673_v16 = vld [vmem:[%s2424_s2 + $0x10] sm:$0xff] }
  0x36   : > { %s342_s27 = scalar_select %p341_p5, %s1868_s13, 1  ;;  %1645 = vset.pattern.permute.xlu1 %v1793_v13  ;;  %v674_v17 = vld [vmem:[%s2424_s2 + $0x18] sm:$0xff]  ;;  %v360_v19 = vand.u32 127, %v359_v18  ;;  %v1794_v24 = vmov 0.0   ;;  %vm414_vm2 = vcmask 138240   ;;  %vm443_vm3 = vcmask 130048  }
  0x37   : > { %s2443_s22 = smov 1   ;;  %s2439_s25 = smov 127   ;;  %vm2046_vm6 = vmneg %vm443_vm3  ;;  %vm467_vm7 = vcmask 121856   ;;  %vm495_vm8 = vcmask 7168   ;;  %vm527_vm9 = vcmask 1039360   ;;  %vm555_vm10 = vcmask 924672  }
  0x38   : > { %s1535_s29 = sshll.u32 %s342_s27, 6  ;;  %s2437_s26 = smov 113   ;;  %v361_v20 = vadd.s32 128, %v360_v19  ;;  %v366_v22 = vand.u32 15, %v360_v19  ;;  %vm583_vm11 = vcmask 916480   ;;  %vm607_vm12 = vcmask 908288  }
  0x39   : > { %s1935_s16 = scalar_lea.vmem %s2422_s0, %s1535_s29  ;;  %s2435_s28 = smov 112   ;;  %vm725_vm13 = vcmask 261120   ;;  %vm1292_vm14 = vcmask 15360  }
  0x3a   : > { %v351_v0 = vld [vmem:[%s1935_s16 + $0x20] sm:$0xff]  ;;  %v353_v1 = vld [vmem:[%s1935_s16 + $0x30] sm:$0xff]  ;;  %v352_v5 = vld [vmem:[%s1935_s16 + $0x28] sm:$0xff]  ;;  %s2441_s27 = smov 111   ;;  %v373_v21 = vand.u32 15, %v361_v20  ;;  %vm386_vm1 = vcmp.ge.s32.totalorder %v366_v22, 1 }
  0x3b   : > { %v347_v2 = vld [vmem:[%s1935_s16] sm:$0xff]  ;;  %v1940_v3 = vpack.c.bf16 %v353_v1, %v351_v0  ;;  %v349_v4 = vld [vmem:[%s1935_s16 + $0x10] sm:$0xff]  ;;  %v354_v6 = vld [vmem:[%s1935_s16 + $0x38] sm:$0xff]  ;;  %v1506_v26 = vsel %vm386_vm1, 1.0, %v1794_v24  ;;  %vm394_vm5 = vcmp.le.s32.totalorder %v366_v22, 14  ;;  %p2459_p9 = scmp.ne.s32.totalorder %s2445_s19, 0 }
  0x3c   : > { %v1945_v7 = vpack.c.bf16 %v349_v4, %v347_v2  ;;  %v348_v8 = vld [vmem:[%s1935_s16 + $0x8] sm:$0xff]  ;;  %v350_v9 = vld [vmem:[%s1935_s16 + $0x18] sm:$0xff]  ;;  %v1951_v10 = vpack.c.bf16 %v354_v6, %v352_v5  ;;  %vm387_vm0 = vcmp.ge.s32.totalorder %v373_v21, 1  ;;  %v2034_v29 = vpack.c.bf16 %v1506_v26, %v1506_v26 }
  0x3d   : > { %410 = vrot.lane.b32.xlu1 %v1940_v3, %s1785_s21  ;;  %v1955_v11 = vpack.c.bf16 %v350_v9, %v348_v8  ;;  %v1507_v25 = vsel %vm387_vm0, 1.0, %v1794_v24  ;;  %vm395_vm4 = vcmp.le.s32.totalorder %v373_v21, 14  ;;  %v1508_v47 = vsel %vm394_vm5, 1.0, %v1794_v24 }
  0x3e   : > { %406 = vrot.lane.b32.xlu0 %v1945_v7, %s1785_s21  ;;  %v2032_v28 = vpack.c.bf16 %v1507_v25, %v1507_v25  ;;  %v1509_v44 = vsel %vm395_vm4, 1.0, %v1794_v24  ;;  %v2055_v52 = vpack.c.bf16 %v1508_v47, %v1508_v47 }
  0x3f   : > { %v2050_v48 = vpack.c.bf16 %v1509_v44, %v1509_v44 }
  0x41   : > { %412 = vrot.lane.b32.xlu1 %v1951_v10, %s1785_s21 }
  0x42   : > { %408 = vrot.lane.b32.xlu0 %v1955_v11, %s1785_s21 }
  0x45   : > { %437 = vrot.lane.b32.xlu1 %v1955_v11, %s1786_s23 }
  0x46   : > { %435 = vrot.lane.b32.xlu0 %v1945_v7, %s1786_s23 }
  0x49   : > { %441 = vrot.lane.b32.xlu1 %v1951_v10, %s1786_s23 }
  0x4a   : > { %439 = vrot.lane.b32.xlu0 %v1940_v3, %s1786_s23 }
  0x4d   : > { %461 = vrot.lane.b32.xlu1 %v1955_v11, %s1787_s17 }
  0x4e   : > { %459 = vrot.lane.b32.xlu0 %v1945_v7, %s1787_s17 }
  0x51   : > { %465 = vrot.lane.b32.xlu1 %v1951_v10, %s1787_s17 }
  0x52   : > { %463 = vrot.lane.b32.xlu0 %v1940_v3, %s1787_s17 }
  0x55   : > { %489 = vrot.lane.b32.xlu1 %v1955_v11, %s2443_s22 }
  0x56   : > { %487 = vrot.lane.b32.xlu0 %v1945_v7, %s2443_s22 }
  0x59   : > { %493 = vrot.lane.b32.xlu1 %v1951_v10, %s2443_s22 }
  0x5a   : > { %491 = vrot.lane.b32.xlu0 %v1940_v3, %s2443_s22  ;;  %s2455_s22 = smov 127  }
  0x5d   : > { %519 = vrot.lane.b32.xlu1 %v1945_v7, %s2439_s25 }
  0x5e   : > { %521 = vrot.lane.b32.xlu0 %v1955_v11, %s2439_s25 }
  0x61   : > { %523 = vrot.lane.b32.xlu1 %v1940_v3, %s2439_s25 }
  0x62   : > { %525 = vrot.lane.b32.xlu0 %v1951_v10, %s2439_s25  ;;  %s2457_s25 = smov 112  }
  0x65   : > { %547 = vrot.lane.b32.xlu1 %v1945_v7, %s2437_s26 }
  0x66   : > { %549 = vrot.lane.b32.xlu0 %v1955_v11, %s2437_s26 }
  0x69   : > { %551 = vrot.lane.b32.xlu1 %v1940_v3, %s2437_s26 }
  0x6a   : > { %553 = vrot.lane.b32.xlu0 %v1951_v10, %s2437_s26 }
  0x6d   : > { %577 = vrot.lane.b32.xlu1 %v1955_v11, %s2435_s28 }
  0x6e   : > { %575 = vrot.lane.b32.xlu0 %v1945_v7, %s2435_s28 }
  0x71   : > { %581 = vrot.lane.b32.xlu1 %v1951_v10, %s2435_s28 }
  0x72   : > { %579 = vrot.lane.b32.xlu0 %v1940_v3, %s2435_s28 }
  0x75   : > { %599 = vrot.lane.b32.xlu1 %v1945_v7, %s2441_s27 }
  0x76   : > { %601 = vrot.lane.b32.xlu0 %v1955_v11, %s2441_s27 }
  0x79   : > { %603 = vrot.lane.b32.xlu1 %v1940_v3, %s2441_s27 }
  0x7a   : > { %605 = vrot.lane.b32.xlu0 %v1951_v10, %s2441_s27  ;;  %s2458_s27 = smov 111  }
  0x7d   : > { %682 = vperm.xlu1 %1645, %v672_v15  }
  0x7e   : > { %677 = vperm.xlu0 %1644, %v671_v14  }
  0x81   : > { %687 = vperm.xlu1 %1645, %v673_v16  }
  0x82   : > { %692 = vperm.xlu0 %1644, %v674_v17  }
  0xaf   : > { %v411_v23 = vpop.permute.xlu1 %410 }
  0xb0   : > { %v407_v27 = vpop.permute.xlu0 %406  ;;  %v425_v38 = vsel %vm414_vm2, 0, %v411_v23 }
  0xb1   : > { %v422_v31 = vsel %vm414_vm2, 0, %v407_v27  ;;  %v429_v41 = vmul.bf16 %v425_v38, %v2034_v29 }
  0xb2   : > { %v427_v36 = vmul.bf16 %v422_v31, %v2034_v29 }
  0xb3   : > { %v413_v30 = vpop.permute.xlu1 %412 }
  0xb4   : > { %v409_v32 = vpop.permute.xlu0 %408  ;;  %v416_v33 = vsel %vm414_vm2, %v411_v23, %v413_v30 }
  0xb5   : > { %v415_v34 = vsel %vm414_vm2, %v407_v27, %v409_v32  ;;  %v430_v39 = vmul.bf16 %v416_v33, %v2032_v28 }
  0xb6   : > { %v428_v35 = vmul.bf16 %v415_v34, %v2032_v28 }
  0xb7   : > { %v438_v37 = vpop.permute.xlu1 %437 }
  0xb8   : > { %732 = vmatprep.subr.bf16.mxu0 %v428_v35  ;;  %v436_v40 = vpop.permute.xlu0 %435 }
  0xb9   : > { %733 = vmatpush1.bf16.msra.mxu0 %v427_v36  ;;  %v444_v42 = vsel %vm443_vm3, %v436_v40, %v438_v37 }
  0xba   : > { %734 = vmatprep.subr.bf16.mxu0 %v430_v39 }
  0xbb   : > { %v442_v43 = vpop.permute.xlu1 %441 }
  0xbc   : > { %v440_v45 = vpop.permute.xlu0 %439 }
  0xbd   : > { %735 = vmatpush1.bf16.msra.mxu0 %v429_v41  ;;  %v445_v49 = vsel %vm443_vm3, %v440_v45, %v442_v43 }
  0xbe   : > { %736 = vmatprep.subr.bf16.mxu0 %v444_v42 }
  0xbf   : > { %v462_v50 = vpop.permute.xlu1 %461 }
  0xc0   : > { %v460_v51 = vpop.permute.xlu0 %459 }
  0xc1   : > { %1538 = vmatpush1.bf16.msk.msra.mxu0 %vm2046_vm6, %v436_v40  ;;  %v468_v53 = vsel %vm467_vm7, %v460_v51, %v462_v50  ;;  %v474_v54 = vsel %vm467_vm7, 0, %v460_v51 }
  0xc2   : > { %738 = vmatprep.subr.bf16.mxu0 %v445_v49  ;;  %v480_v55 = vmul.bf16 %v468_v53, %v2050_v48  ;;  %v479_v58 = vmul.bf16 %v474_v54, %v2055_v52 }
  0xc3   : > { %v466_v56 = vpop.permute.xlu1 %465 }
  0xc4   : > { %v464_v57 = vpop.permute.xlu0 %463 }
  0xc5   : > { %1540 = vmatpush1.bf16.msk.msra.mxu0 %vm2046_vm6, %v440_v45  ;;  %v469_v59 = vsel %vm467_vm7, %v464_v57, %v466_v56  ;;  %v477_v60 = vsel %vm467_vm7, 0, %v464_v57  ;;  %v1646_v56 = vld [vmem:[#allocation3] ss:$12 sps:$4 sm:$0xff]  }
  0xc6   : > { %740 = vmatprep.subr.bf16.mxu0 %v480_v55  ;;  %v482_v61 = vmul.bf16 %v469_v59, %v2050_v48  ;;  %v481_v0 = vmul.bf16 %v477_v60, %v2055_v52 }
  0xc7   : > { %v490_v62 = vpop.permute.xlu1 %489 }
  0xc8   : > { %v488_v63 = vpop.permute.xlu0 %487 }
  0xc9   : > { %741 = vmatpush1.bf16.msra.mxu0 %v479_v58  ;;  %v496_v1 = vsel %vm495_vm8, %v488_v63, %v490_v62  ;;  %v502_v2 = vsel %vm495_vm8, 0, %v488_v63  ;;  %v1649_v58 = vld [vmem:[#allocation3 + $0x1c] ss:$12 sps:$4 sm:$0xff]   ;;  %v1651_v62 = vld [vmem:[#allocation3 + $0x18] ss:$12 sps:$4 sm:$0xff]  }
  0xca   : > { %742 = vmatprep.subr.bf16.mxu0 %v482_v61  ;;  %v508_v4 = vmul.bf16 %v496_v1, %v2032_v28  ;;  %v507_v8 = vmul.bf16 %v502_v2, %v2034_v29  ;;  %v1652_v63 = vld [vmem:[#allocation3 + $0x8] ss:$12 sps:$4 sm:$0xff]  }
  0xcb   : > { %v494_v5 = vpop.permute.xlu1 %493 }
  0xcc   : > { %v492_v6 = vpop.permute.xlu0 %491 }
  0xcd   : > { %743 = vmatpush1.bf16.msra.mxu0 %v481_v0  ;;  %v497_v9 = vsel %vm495_vm8, %v492_v6, %v494_v5  ;;  %v505_v12 = vsel %vm495_vm8, 0, %v492_v6  ;;  %v1653_v0 = vld [vmem:[#allocation3 + $0x20] ss:$12 sps:$4 sm:$0xff]  }
  0xce   : > { %744 = vmatprep.subr.bf16.mxu0 %v508_v4  ;;  %v510_v14 = vmul.bf16 %v497_v9, %v2032_v28  ;;  %v509_v17 = vmul.bf16 %v505_v12, %v2034_v29 }
  0xcf   : > { %v520_v15 = vpop.permute.xlu1 %519 }
  0xd0   : > { %v522_v16 = vpop.permute.xlu0 %521 }
  0xd1   : > { %745 = vmatpush1.bf16.msra.mxu0 %v507_v8  ;;  %v534_v21 = vsel %vm527_vm9, %v522_v16, 0  ;;  %v528_v24 = vsel %vm527_vm9, %v520_v15, %v522_v16 }
  0xd2   : > { %746 = vmatprep.subr.bf16.mxu0 %v510_v14  ;;  %v540_v25 = vmul.bf16 %v534_v21, %v2050_v48  ;;  %v539_v30 = vmul.bf16 %v528_v24, %v2055_v52 }
  0xd3   : > { %v524_v19 = vpop.permute.xlu1 %523 }
  0xd4   : > { %v526_v20 = vpop.permute.xlu0 %525 }
  0xd5   : > { %747 = vmatpush1.bf16.msra.mxu0 %v509_v17  ;;  %v537_v26 = vsel %vm527_vm9, %v526_v20, 0 }
  0xd6   : > { %748 = vmatprep.subr.bf16.mxu0 %v1955_v11  ;;  %v529_v11 = vsel %vm527_vm9, %v524_v19, %v526_v20 }
  0xd7   : > { %v548_v23 = vpop.permute.xlu1 %547  ;;  %v541_v33 = vmul.bf16 %v529_v11, %v2055_v52 }
  0xd8   : > { %v550_v22 = vpop.permute.xlu0 %549 }
  0xd9   : > { %749 = vmatpush1.bf16.msra.mxu0 %v1945_v7  ;;  %v542_v7 = vmul.bf16 %v537_v26, %v2050_v48  ;;  %v562_v31 = vsel %vm555_vm10, %v550_v22, 0  ;;  %v556_v34 = vsel %vm555_vm10, %v548_v23, %v550_v22 }
  0xda   : > { %750 = vmatprep.subr.bf16.mxu0 %v1951_v10  ;;  %v568_v35 = vmul.bf16 %v562_v31, %v2032_v28  ;;  %v567_v37 = vmul.bf16 %v556_v34, %v2034_v29 }
  0xdb   : > { %v552_v10 = vpop.permute.xlu1 %551 }
  0xdc   : > { %v554_v27 = vpop.permute.xlu0 %553 }
  0xdd   : > { %751 = vmatpush1.bf16.msra.mxu0 %v1940_v3  ;;  %v565_v36 = vsel %vm555_vm10, %v554_v27, 0  ;;  %v557_v38 = vsel %vm555_vm10, %v552_v10, %v554_v27 }
  0xde   : > { %752 = vmatprep.subr.bf16.mxu0 %v540_v25  ;;  %v570_v39 = vmul.bf16 %v565_v36, %v2032_v28  ;;  %v569_v41 = vmul.bf16 %v557_v38, %v2034_v29  ;;  %v1102_v38 = vld [vmem:[%s2426_s4] sm:$0xff] }
  0xdf   : > { %v578_v3 = vpop.permute.xlu1 %577 }
  0xe0   : > { %v576_v32 = vpop.permute.xlu0 %575 }
  0xe1   : > { %753 = vmatpush1.bf16.msra.mxu0 %v539_v30  ;;  %v584_v45 = vsel %vm583_vm11, %v576_v32, %v578_v3 }
  0xe2   : > { %754 = vmatprep.subr.bf16.mxu0 %v542_v7 }
  0xe3   : > { %v582_v42 = vpop.permute.xlu1 %581 }
  0xe4   : > { %v580_v40 = vpop.permute.xlu0 %579 }
  0xe5   : > { %755 = vmatpush1.bf16.msra.mxu0 %v541_v33  ;;  %v585_v53 = vsel %vm583_vm11, %v580_v40, %v582_v42  ;;  %v1104_v40 = vld [vmem:[%s2426_s4 + $0x10] sm:$0xff] }
  0xe6   : > { %756 = vmatprep.subr.bf16.mxu0 %v568_v35 }
  0xe7   : > { %v600_v44 = vpop.permute.xlu1 %599 }
  0xe8   : > { %v602_v43 = vpop.permute.xlu0 %601 }
  0xe9   : > { %757 = vmatpush1.bf16.msra.mxu0 %v567_v37  ;;  %v614_v47 = vsel %vm607_vm12, %v602_v43, 0  ;;  %v608_v50 = vsel %vm607_vm12, %v600_v44, %v602_v43  ;;  %v1656_v37 = vld [vmem:[%s2425_s3 + $0x4] ss:$12 sps:$4 sm:$0xff]  }
  0xea   : > { %758 = vmatprep.subr.bf16.mxu0 %v570_v39  ;;  %v620_v51 = vmul.bf16 %v614_v47, %v2050_v48  ;;  %v619_v57 = vmul.bf16 %v608_v50, %v2055_v52  ;;  %1194 = vmatprep.mubr.bf16.mxu1 %v1656_v37  ;;  %v1103_v39 = vld [vmem:[%s2426_s4 + $0x8] sm:$0xff] }
  0xeb   : > { %v604_v55 = vpop.permute.xlu1 %603 }
  0xec   : > { %v606_v49 = vpop.permute.xlu0 %605 }
  0xed   : > { %759 = vmatpush1.bf16.msra.mxu0 %v569_v41  ;;  %v617_v54 = vsel %vm607_vm12, %v606_v49, 0  ;;  %v609_v60 = vsel %vm607_vm12, %v604_v55, %v606_v49  ;;  %v1105_v41 = vld [vmem:[%s2426_s4 + $0x18] sm:$0xff] }
  0xee   : > { %1541 = vmatprep.subr.msk.bf16.mxu0 %vm583_vm11, %v578_v3  ;;  %v622_v59 = vmul.bf16 %v617_v54, %v2050_v48  ;;  %v621_v61 = vmul.bf16 %v609_v60, %v2055_v52 }
  0xf1   : > { %761 = vmatpush1.bf16.msra.mxu0 %v584_v45 }
  0xf2   : > { %1542 = vmatprep.subr.msk.bf16.mxu0 %vm583_vm11, %v582_v42 }
  0xf5   : > { %763 = vmatpush1.bf16.msra.mxu0 %v585_v53 }
  0xf6   : > { %785 = vmatprep.subr.bf16.mxu0 %v620_v51 }
  0xf8   : > { %765 = vmatmul.mubr.bf16.vlgmr.msra.gmra.mrb[0].mxu0 %v1646_v56 }
  0xf9   : > { %786 = vmatpush1.bf16.msra.mxu0 %v619_v57  ;;  %774 = vmatprep.mubr.bf16.mxu0 %v1649_v58 }
  0xfa   : > { %787 = vmatprep.subr.bf16.mxu0 %v622_v59 }
  0xfc   : > { %v683_v4 = vpop.permute.xlu1 %682 }
  0xfd   : > { %788 = vmatpush1.bf16.msra.mxu0 %v621_v61  ;;  %v678_v1 = vpop.permute.xlu0 %677 }
 0x100   : > { %775 = vmatmul.mubr.bf16.gmra.mrb[4].mxu0 %v1651_v62  ;;  %v688_v21 = vpop.permute.xlu1 %687 }
 0x101   : > { %817 = vmatprep.mubr.bf16.mxu0 %v1793_v13  ;;  %v693_v27 = vpop.permute.xlu0 %692 }
 0x108   : > { %1516 = vmatmul.mubr.msk.bf16.vlgmr.msra.gmra.mrb[0].mxu0 %vm725_vm13, %v1652_v63 }
 0x109   : > { %827 = vmatprep.mubr.bf16.mxu0 %v1793_v13 }
 0x110   : > { %1517 = vmatmul.mubr.msk.bf16.gmra.mrb[4].mxu0 %vm725_vm13, %v1653_v0 }
 0x1db   : > { %v819_v2 = vpop.f32.mrb[0].mxu0 }
 0x1dc   : > { %v1549_v5 = vadd.f32 %v819_v2, %v678_v1  ;;  %v821_v6 = vpop.f32.mrb[1].mxu0 }
 0x1dd   : > { %v1550_v8 = vadd.f32 %v821_v6, %v678_v1  ;;  %v823_v9 = vpop.f32.mrb[2].mxu0 }
 0x1de   : > { %v1551_v12 = vadd.f32 %v823_v9, %v683_v4  ;;  %v825_v14 = vpop.f32.mrb[3].mxu0  ;;  %v838_v16 = vmax.f32 %v1549_v5, 0.0 }
 0x1df   : > { %v1552_v15 = vadd.f32 %v825_v14, %v683_v4  ;;  %v839_v19 = vmax.f32 %v1550_v8, 0.0 }
 0x1e0   : > { %v840_v17 = vmax.f32 %v1551_v12, 0.0 }
 0x1e1   : > { %v841_v20 = vmax.f32 %v1552_v15, 0.0 }
 0x1e2   : > { %v2111_v22 = vpack.c.bf16 %v840_v17, %v838_v16 }
 0x1e3   : > { %v2113_v23 = vpack.c.bf16 %v841_v20, %v839_v19  ;;  %v829_v24 = vpop.f32.mrb[4].mxu0 }
 0x1e4   : > { %v1553_v25 = vadd.f32 %v829_v24, %v688_v21  ;;  %v831_v26 = vpop.f32.mrb[5].mxu0  ;;  %854 = vrot.lane.b32.xlu1 %v2111_v22, %s1785_s21 }
 0x1e5   : > { %v1554_v30 = vadd.f32 %v831_v26, %v688_v21  ;;  %v833_v11 = vpop.f32.mrb[6].mxu0  ;;  %856 = vrot.lane.b32.xlu0 %v2113_v23, %s1785_s21 }
 0x1e6   : > { %v1555_v7 = vadd.f32 %v833_v11, %v693_v27  ;;  %v835_v31 = vpop.f32.mrb[7].mxu0  ;;  %v842_v32 = vmax.f32 %v1553_v25, 0.0 }
 0x1e7   : > { %v1556_v10 = vadd.f32 %v835_v31, %v693_v27  ;;  %v843_v34 = vmax.f32 %v1554_v30, 0.0 }
 0x1e8   : > { %v844_v33 = vmax.f32 %v1555_v7, 0.0 }
 0x1e9   : > { %v845_v35 = vmax.f32 %v1556_v10, 0.0 }
 0x1ea   : > { %v2119_v36 = vpack.c.bf16 %v844_v33, %v842_v32 }
 0x1eb   : > { %v2121_v3 = vpack.c.bf16 %v845_v35, %v843_v34 }
 0x1ec   : > { %858 = vrot.lane.b32.xlu1 %v2119_v36, %s1785_s21 }
 0x1ed   : > { %860 = vrot.lane.b32.xlu0 %v2121_v3, %s1785_s21  ;;  %s2454_s21 = smov 1  }
 0x1f0   : > { %880 = vrot.lane.b32.xlu1 %v2111_v22, %s1786_s23 }
 0x1f1   : > { %882 = vrot.lane.b32.xlu0 %v2113_v23, %s1786_s23 }
 0x1f4   : > { %884 = vrot.lane.b32.xlu1 %v2119_v36, %s1786_s23 }
 0x1f5   : > { %886 = vrot.lane.b32.xlu0 %v2121_v3, %s1786_s23 }
 0x1f8   : > { %902 = vrot.lane.b32.xlu1 %v2111_v22, %s1787_s17 }
 0x1f9   : > { %904 = vrot.lane.b32.xlu0 %v2113_v23, %s1787_s17 }
 0x1fc   : > { %906 = vrot.lane.b32.xlu1 %v2119_v36, %s1787_s17 }
 0x1fd   : > { %908 = vrot.lane.b32.xlu0 %v2121_v3, %s1787_s17  ;;  %s2456_s17 = smov 113  }
 0x200   : > { %928 = vrot.lane.b32.xlu1 %v2111_v22, %s2454_s21 }
 0x201   : > { %930 = vrot.lane.b32.xlu0 %v2113_v23, %s2454_s21 }
 0x204   : > { %932 = vrot.lane.b32.xlu1 %v2119_v36, %s2454_s21 }
 0x205   : > { %934 = vrot.lane.b32.xlu0 %v2121_v3, %s2454_s21  ;;  %s1795_s21 = smov [#allocation6]  }
 0x208   : > { %960 = vrot.lane.b32.xlu1 %v2113_v23, %s2455_s22 }
 0x209   : > { %958 = vrot.lane.b32.xlu0 %v2111_v22, %s2455_s22 }
 0x20c   : > { %964 = vrot.lane.b32.xlu1 %v2121_v3, %s2455_s22 }
 0x20d   : > { %962 = vrot.lane.b32.xlu0 %v2119_v36, %s2455_s22  ;;  %s338_s22 = sand.u32 1, %s1772_s10  }
 0x20e   : > { %s2380_s14 = scalar_lea.sflag [#allocation5], %s338_s22 }
 0x210   : > { %986 = vrot.lane.b32.xlu1 %v2113_v23, %s2456_s17 }
 0x211   : > { %984 = vrot.lane.b32.xlu0 %v2111_v22, %s2456_s17 }
 0x214   : > { %990 = vrot.lane.b32.xlu1 %v2121_v3, %s2456_s17 }
 0x215   : > { %988 = vrot.lane.b32.xlu0 %v2119_v36, %s2456_s17  ;;  %s1503_s17 = sshll.u32 %s338_s22, 6 }
 0x216   : > { %s340_s26 = scalar_lea.vmem [#allocation6], %s1503_s17 }
 0x217   : > { %s1423_s28 = sshll.u32 %s340_s26, 4  ;;  %s2376_s28 = int_to_ptr.vmem [resolvable:$true] %s1423_s28 }
 0x218   : > { %1010 = vrot.lane.b32.xlu1 %v2111_v22, %s2457_s25  ;;  %s1714_s24 = scalar_lea.vmem %s2376_s28, 1024 }
 0x219   : > { %1012 = vrot.lane.b32.xlu0 %v2113_v23, %s2457_s25  ;;  %p1715_p6 = scmp.ne.s32.totalorder %s2376_s28, %s1714_s24 }
 0x21b   : > { %p1716_p10 = pnand %p1715_p6, %p2459_p9 }
 0x21c   : > { %1014 = vrot.lane.b32.xlu1 %v2119_v36, %s2457_s25 }
 0x21d   : > { %1016 = vrot.lane.b32.xlu0 %v2121_v3, %s2457_s25  ;;  %s1536_s25 = sshll.u32 %s1868_s13, 10  ;;  %p1717_p12 = pneg %p1716_p10 }
 0x21e   : > { %s2370_s29 = scalar_lea.hbm %s2431_s9, %s1536_s25 }
 0x220   : > { %1034 = vrot.lane.b32.xlu1 %v2113_v23, %s2458_s27 }
 0x221   : > { %1032 = vrot.lane.b32.xlu0 %v2111_v22, %s2458_s27 }
 0x224   : > { %1038 = vrot.lane.b32.xlu1 %v2121_v3, %s2458_s27 }
 0x225   : > { %1036 = vrot.lane.b32.xlu0 %v2119_v36, %s2458_s27 }
 0x228   : > { %1108 = vperm.xlu1 %1645, %v1102_v38  }
 0x229   : > { %1113 = vperm.xlu0 %1644, %v1103_v39  }
 0x22c   : > { %1118 = vperm.xlu1 %1645, %v1104_v40  }
 0x22d   : > { %1123 = vperm.xlu0 %1644, %v1105_v41  }
 0x256   : > { %v855_v42 = vpop.permute.xlu1 %854 }
 0x257   : > { %v867_v43 = vsel %vm414_vm2, 0, %v855_v42  ;;  %v857_v44 = vpop.permute.xlu0 %856 }
 0x258   : > { %v862_v45 = vsel %vm414_vm2, %v855_v42, %v857_v44  ;;  %v872_v49 = vmul.bf16 %v867_v43, %v2034_v29 }
 0x259   : > { %v873_v47 = vmul.bf16 %v862_v45, %v2032_v28 }
 0x25b   : > { %1162 = vmatprep.subr.bf16.mxu1 %v873_v47 }
 0x25c   : > { %1163 = vmatpush1.bf16.msra.mxu1 %v872_v49 }
 0x25e   : > { %v859_v50 = vpop.permute.xlu1 %858 }
 0x25f   : > { %v870_v51 = vsel %vm414_vm2, 0, %v859_v50  ;;  %v861_v53 = vpop.permute.xlu0 %860 }
 0x260   : > { %v863_v54 = vsel %vm414_vm2, %v859_v50, %v861_v53  ;;  %v874_v56 = vmul.bf16 %v870_v51, %v2034_v29 }
 0x261   : > { %v875_v55 = vmul.bf16 %v863_v54, %v2032_v28 }
 0x262   : > { %v881_v57 = vpop.permute.xlu1 %880 }
 0x263   : > { %1164 = vmatprep.subr.bf16.mxu1 %v875_v55  ;;  %v883_v58 = vpop.permute.xlu0 %882 }
 0x264   : > { %1165 = vmatpush1.bf16.msra.mxu1 %v874_v56  ;;  %v888_v59 = vsel %vm443_vm3, %v881_v57, %v883_v58 }
 0x265   : > { %1166 = vmatprep.subr.bf16.mxu1 %v888_v59 }
 0x266   : > { %v885_v60 = vpop.permute.xlu1 %884 }
 0x267   : > { %v887_v61 = vpop.permute.xlu0 %886 }
 0x268   : > { %1544 = vmatpush1.bf16.msk.msra.mxu1 %vm2046_vm6, %v881_v57  ;;  %v889_v62 = vsel %vm443_vm3, %v885_v60, %v887_v61 }
 0x269   : > { %1168 = vmatprep.subr.bf16.mxu1 %v889_v62 }
 0x26a   : > { %v903_v63 = vpop.permute.xlu1 %902 }
 0x26b   : > { %v915_v0 = vsel %vm467_vm7, 0, %v903_v63  ;;  %v905_v1 = vpop.permute.xlu0 %904 }
 0x26c   : > { %v910_v2 = vsel %vm467_vm7, %v903_v63, %v905_v1  ;;  %1546 = vmatpush1.bf16.msk.msra.mxu1 %vm2046_vm6, %v885_v60  ;;  %v920_v5 = vmul.bf16 %v915_v0, %v2055_v52 }
 0x26d   : > { %v921_v4 = vmul.bf16 %v910_v2, %v2050_v48  ;;  %v1657_v2 = vld [vmem:[%s2425_s3 + $0x1c] ss:$12 sps:$4 sm:$0xff]  }
 0x26e   : > { %v907_v6 = vpop.permute.xlu1 %906 }
 0x26f   : > { %v918_v8 = vsel %vm467_vm7, 0, %v907_v6  ;;  %1170 = vmatprep.subr.bf16.mxu1 %v921_v4  ;;  %v909_v9 = vpop.permute.xlu0 %908 }
 0x270   : > { %v911_v12 = vsel %vm467_vm7, %v907_v6, %v909_v9  ;;  %1171 = vmatpush1.bf16.msra.mxu1 %v920_v5  ;;  %v922_v15 = vmul.bf16 %v918_v8, %v2055_v52  ;;  %v1659_v9 = vld [vmem:[%s2425_s3 + $0x18] ss:$12 sps:$4 sm:$0xff]  }
 0x271   : > { %v923_v14 = vmul.bf16 %v911_v12, %v2050_v48 }
 0x272   : > { %v929_v16 = vpop.permute.xlu1 %928 }
 0x273   : > { %v941_v46 = vsel %vm495_vm8, 0, %v929_v16  ;;  %1172 = vmatprep.subr.bf16.mxu1 %v923_v14  ;;  %v931_v17 = vpop.permute.xlu0 %930 }
 0x274   : > { %v936_v19 = vsel %vm495_vm8, %v929_v16, %v931_v17  ;;  %1173 = vmatpush1.bf16.msra.mxu1 %v922_v15  ;;  %v946_v21 = vmul.bf16 %v941_v46, %v2034_v29 }
 0x275   : > { %v947_v20 = vmul.bf16 %v936_v19, %v2032_v28 }
 0x276   : > { %v933_v24 = vpop.permute.xlu1 %932 }
 0x277   : > { %v944_v25 = vsel %vm495_vm8, 0, %v933_v24  ;;  %1174 = vmatprep.subr.bf16.mxu1 %v947_v20  ;;  %v935_v26 = vpop.permute.xlu0 %934 }
 0x278   : > { %v937_v27 = vsel %vm495_vm8, %v933_v24, %v935_v26  ;;  %1175 = vmatpush1.bf16.msra.mxu1 %v946_v21  ;;  %v948_v11 = vmul.bf16 %v944_v25, %v2034_v29 }
 0x279   : > { %v949_v30 = vmul.bf16 %v937_v27, %v2032_v28 }
 0x27a   : > { %v961_v7 = vpop.permute.xlu1 %960 }
 0x27b   : > { %1176 = vmatprep.subr.bf16.mxu1 %v949_v30  ;;  %v959_v31 = vpop.permute.xlu0 %958  ;;  %v971_v33 = vsel %vm527_vm9, %v961_v7, 0 }
 0x27c   : > { %1177 = vmatpush1.bf16.msra.mxu1 %v948_v11  ;;  %v977_v35 = vmul.bf16 %v971_v33, %v2050_v48  ;;  %v966_v37 = vsel %vm527_vm9, %v959_v31, %v961_v7 }
 0x27d   : > { %1178 = vmatprep.subr.bf16.mxu1 %v2113_v23  ;;  %v976_v23 = vmul.bf16 %v966_v37, %v2055_v52 }
 0x27e   : > { %v965_v10 = vpop.permute.xlu1 %964 }
 0x27f   : > { %v963_v32 = vpop.permute.xlu0 %962  ;;  %v974_v39 = vsel %vm527_vm9, %v965_v10, 0 }
 0x280   : > { %1179 = vmatpush1.bf16.msra.mxu1 %v2111_v22  ;;  %v979_v41 = vmul.bf16 %v974_v39, %v2050_v48  ;;  %v967_v22 = vsel %vm527_vm9, %v963_v32, %v965_v10  ;;  %v1285_v39 = vld [vmem:[%s2427_s5 + $0x8] sm:$0xff] }
 0x281   : > { %1180 = vmatprep.subr.bf16.mxu1 %v2121_v3  ;;  %v978_v43 = vmul.bf16 %v967_v22, %v2055_v52  ;;  %v1284_v22 = vld [vmem:[%s2427_s5] sm:$0xff] }
 0x282   : > { %v987_v34 = vpop.permute.xlu1 %986 }
 0x283   : > { %v985_v38 = vpop.permute.xlu0 %984  ;;  %v997_v3 = vsel %vm555_vm10, %v987_v34, 0 }
 0x284   : > { %1181 = vmatpush1.bf16.msra.mxu1 %v2119_v36  ;;  %v1003_v45 = vmul.bf16 %v997_v3, %v2032_v28  ;;  %v992_v36 = vsel %vm555_vm10, %v985_v38, %v987_v34 }
 0x285   : > { %1182 = vmatprep.subr.bf16.mxu1 %v977_v35  ;;  %v1002_v50 = vmul.bf16 %v992_v36, %v2034_v29 }
 0x286   : > { %v991_v40 = vpop.permute.xlu1 %990 }
 0x287   : > { %v989_v42 = vpop.permute.xlu0 %988  ;;  %v1000_v49 = vsel %vm555_vm10, %v991_v40, 0 }
 0x288   : > { %1183 = vmatpush1.bf16.msra.mxu1 %v976_v23  ;;  %v1005_v53 = vmul.bf16 %v1000_v49, %v2032_v28  ;;  %v993_v54 = vsel %vm555_vm10, %v989_v42, %v991_v40 }
 0x289   : > { %1184 = vmatprep.subr.bf16.mxu1 %v979_v41  ;;  %v1004_v56 = vmul.bf16 %v993_v54, %v2034_v29  ;;  %v1654_v29 = vld [vmem:[%s2425_s3] ss:$12 sps:$4 sm:$0xff]  }
 0x28a   : > { %v1011_v44 = vpop.permute.xlu1 %1010 }
 0x28b   : > { %v1013_v47 = vpop.permute.xlu0 %1012 }
 0x28c   : > { %1185 = vmatpush1.bf16.msra.mxu1 %v978_v43  ;;  %v1018_v59 = vsel %vm583_vm11, %v1011_v44, %v1013_v47  ;;  %v1286_v43 = vld [vmem:[%s2427_s5 + $0x10] sm:$0xff] }
 0x28d   : > { %1186 = vmatprep.subr.bf16.mxu1 %v1003_v45 }
 0x28e   : > { %v1015_v51 = vpop.permute.xlu1 %1014 }
 0x28f   : > { %v1017_v55 = vpop.permute.xlu0 %1016 }
 0x290   : > { %1187 = vmatpush1.bf16.msra.mxu1 %v1002_v50  ;;  %v1019_v63 = vsel %vm583_vm11, %v1015_v51, %v1017_v55 }
 0x291   : > { %1188 = vmatprep.subr.bf16.mxu1 %v1005_v53 }
 0x292   : > { %v1035_v57 = vpop.permute.xlu1 %1034 }
 0x293   : > { %v1033_v58 = vpop.permute.xlu0 %1032  ;;  %v1045_v60 = vsel %vm607_vm12, %v1035_v57, 0 }
 0x294   : > { %1189 = vmatpush1.bf16.msra.mxu1 %v1004_v56  ;;  %v1051_v28 = vmul.bf16 %v1045_v60, %v2050_v48  ;;  %v1040_v62 = vsel %vm607_vm12, %v1033_v58, %v1035_v57 }
 0x295   : > { %1547 = vmatprep.subr.msk.bf16.mxu1 %vm583_vm11, %v1013_v47  ;;  %v1050_v4 = vmul.bf16 %v1040_v62, %v2055_v52  ;;  %v1287_v47 = vld [vmem:[%s2427_s5 + $0x18] sm:$0xff] }
 0x296   : > { %v1039_v61 = vpop.permute.xlu1 %1038 }
 0x297   : > { %v1048_v0 = vsel %vm607_vm12, %v1039_v61, 0  ;;  %v1037_v1 = vpop.permute.xlu0 %1036 }
 0x298   : > { %1191 = vmatpush1.bf16.msra.mxu1 %v1018_v59  ;;  %v1053_v5 = vmul.bf16 %v1048_v0, %v2050_v48  ;;  %v1041_v6 = vsel %vm607_vm12, %v1037_v1, %v1039_v61  ;;  %v1660_v48 = vld [vmem:[%s2425_s3 + $0x8] ss:$12 sps:$4 sm:$0xff]   ;;  %v1306_v0 = vld [vmem:[%s2428_s6] sm:$0x1] }
 0x299   : > { %1548 = vmatprep.subr.msk.bf16.mxu1 %vm583_vm11, %v1017_v55  ;;  %v1052_v8 = vmul.bf16 %v1041_v6, %v2055_v52  ;;  %v1661_v52 = vld [vmem:[%s2425_s3 + $0x20] ss:$12 sps:$4 sm:$0xff]  }
 0x29a   : > { %v1310_v6 = vld [vmem:[%s2429_s7 + $0x8] sm:$0xff] }
 0x29c   : > { %1193 = vmatpush1.bf16.msra.mxu1 %v1019_v63 }
 0x29d   : > { %1215 = vmatprep.subr.bf16.mxu1 %v1051_v28 }
 0x29f   : > { %1195 = vmatmul.mubr.bf16.vlgmr.msra.gmra.mrb[0].mxu1 %v1654_v29  ;;  %v1314_v29 = vshrl.u32 %v359_v18, 7  ;;  %v1312_v18 = vld [vmem:[%s2429_s7 + $0x18] sm:$0xff] }
 0x2a0   : > { %1216 = vmatpush1.bf16.msra.mxu1 %v1050_v4  ;;  %1204 = vmatprep.mubr.bf16.mxu1 %v1657_v2 }
 0x2a1   : > { %1217 = vmatprep.subr.bf16.mxu1 %v1053_v5  ;;  %v1315_v4 = vsub.s32 0, %v1314_v29 }
 0x2a4   : > { %1218 = vmatpush1.bf16.msra.mxu1 %v1052_v8  ;;  %v1309_v8 = vld [vmem:[%s2429_s7] sm:$0xff] }
 0x2a7   : > { %1205 = vmatmul.mubr.bf16.gmra.mrb[4].mxu1 %v1659_v9  ;;  %v1109_v12 = vpop.permute.xlu1 %1108 }
 0x2a8   : > { %1247 = vmatprep.mubr.bf16.mxu1 %v1793_v13  ;;  %v1114_v46 = vpop.permute.xlu0 %1113 }
 0x2ab   : > { %v1119_v26 = vpop.permute.xlu1 %1118 }
 0x2ac   : > { %v1124_v7 = vpop.permute.xlu0 %1123 }
 0x2af   : > { %1524 = vmatmul.mubr.msk.bf16.vlgmr.msra.gmra.mrb[0].mxu1 %vm725_vm13, %v1660_v48  ;;  %v1311_v48 = vld [vmem:[%s2429_s7 + $0x10] sm:$0xff] }
 0x2b0   : > { %1257 = vmatprep.mubr.bf16.mxu1 %v1793_v13 }
 0x2b7   : > { %1525 = vmatmul.mubr.msk.bf16.gmra.mrb[4].mxu1 %vm725_vm13, %v1661_v52 }
 0x382   : > { %v1249_v14 = vpop.f32.mrb[0].mxu1 }
 0x383   : > { %v2279_v15 = vadd.f32 %v1249_v14, %v1109_v12  ;;  %v1251_v16 = vpop.f32.mrb[1].mxu1 }
 0x384   : > { %v2281_v17 = vadd.f32 %v1251_v16, %v1109_v12  ;;  %v1253_v19 = vpop.f32.mrb[2].mxu1 }
 0x385   : > { %v2283_v20 = vadd.f32 %v1253_v19, %v1114_v46  ;;  %v1255_v21 = vpop.f32.mrb[3].mxu1 }
 0x386   : > { %v2285_v24 = vadd.f32 %v1255_v21, %v1114_v46  ;;  %v1268_v13 = vadd.f32 %v2281_v17, %v2279_v15 }
 0x388   : > { %1269 = vadd.xlane.f32.xlu1 %v1268_v13  ;;  %v1271_v25 = vadd.f32 %v2285_v24, %v2283_v20 }
 0x38a   : > { %v1259_v27 = vpop.f32.mrb[4].mxu1  ;;  %1272 = vadd.xlane.f32.xlu0 %v1271_v25  ;;  %v1334_v25 = vld [vmem:[%s2430_s8 + $0x8] sm:$0xff] }
 0x38b   : > { %v2291_v30 = vadd.f32 %v1259_v27, %v1119_v26  ;;  %v1261_v11 = vpop.f32.mrb[5].mxu1 }
 0x38c   : > { %v2293_v31 = vadd.f32 %v1261_v11, %v1119_v26  ;;  %v1263_v10 = vpop.f32.mrb[6].mxu1  ;;  %v1333_v26 = vld [vmem:[%s2430_s8] sm:$0xff] }
 0x38d   : > { %v2295_v32 = vadd.f32 %v1263_v10, %v1124_v7  ;;  %v1265_v33 = vpop.f32.mrb[7].mxu1 }
 0x38e   : > { %v2297_v34 = vadd.f32 %v1265_v33, %v1124_v7  ;;  %v1274_v35 = vadd.f32 %v2293_v31, %v2291_v30  ;;  %v1336_v33 = vld [vmem:[%s2430_s8 + $0x18] sm:$0xff] }
 0x390   : > { %1275 = vadd.xlane.f32.xlu0 %v1274_v35  ;;  %v1277_v37 = vadd.f32 %v2297_v34, %v2295_v32  ;;  %v1335_v35 = vld [vmem:[%s2430_s8 + $0x10] sm:$0xff] }
 0x392   : > { %1278 = vadd.xlane.f32.xlu1 %v1277_v37 }
 0x415   : > { %v1270_v38 = vpop.xlane.xlu1 %1269 }
 0x416   : > { %v1280_v40 = vmul.f32 0.00390625, %v1270_v38 }
 0x417   : > { %v1273_v23 = vpop.xlane.xlu0 %1272 }
 0x418   : > { %v1281_v41 = vmul.f32 0.00390625, %v1273_v23  ;;  %v1288_v3 = vmul.f32 %v1284_v22, %v1280_v40 }
 0x41a   : > { %v1289_v42 = vmul.f32 %v1285_v39, %v1281_v41  ;;  %v1293_v50 = vsel %vm1292_vm14, %v1288_v3, 0.0 }
 0x41c   : > { %v1294_v45 = vsel %vm1292_vm14, %v1289_v42, 0.0 }
 0x41d   : > { %v1276_v44 = vpop.xlane.xlu0 %1275  ;;  %v1295_v54 = vadd.f32 %v1294_v45, %v1293_v50 }
 0x41e   : > { %v1282_v36 = vmul.f32 0.00390625, %v1276_v44 }
 0x41f   : > { %v1279_v49 = vpop.xlane.xlu1 %1278 }
 0x420   : > { %v1290_v51 = vmul.f32 %v1286_v43, %v1282_v36  ;;  %v1283_v53 = vmul.f32 0.00390625, %v1279_v49 }
 0x422   : > { %v1296_v55 = vsel %vm1292_vm14, %v1290_v51, 0.0  ;;  %v1291_v56 = vmul.f32 %v1287_v47, %v1283_v53 }
 0x423   : > { %v1297_v57 = vadd.f32 %v1296_v55, %v1295_v54 }
 0x424   : > { %v1298_v58 = vsel %vm1292_vm14, %v1291_v56, 0.0 }
 0x425   : > { %v1299_v59 = vadd.f32 %v1298_v58, %v1297_v57 }
 0x427   : > { %v1300_v60 = vrot.slane %v1299_v59, 4 }
 0x429   : > { %v1301_v61 = vadd.f32 %v1300_v60, %v1299_v59 }
 0x42b   : > { %v1302_v28 = vrot.slane %v1301_v61, 2 }
 0x42d   : > { %v1303_v62 = vadd.f32 %v1302_v28, %v1301_v61  ;;  %v1678_v28 = vld [vmem:[%s1935_s16 + $0x10] sm:$0xff] }
 0x42f   : > { %v1304_v63 = vrot.slane %v1303_v62, 1 }
 0x431   : > { %v1305_v1 = vadd.f32 %v1304_v63, %v1303_v62  ;;  %v1679_v63 = vld [vmem:[%s1935_s16 + $0x18] sm:$0xff] }
 0x433   : > { %v1307_v2 = vadd.f32 %v1306_v0, %v1305_v1  ;;  %v1680_v0 = vld [vmem:[%s1935_s16] sm:$0xff] }
 0x435   : > { %v1308_v5 = vmax.f32 %v1307_v2, 0.0  ;;  %v1681_v2 = vld [vmem:[%s1935_s16 + $0x8] sm:$0xff] }
 0x437   : > { %v1316_v9 = vrot.slane %v1308_v5, %v1315_v4 }
 0x439   : > { %v1318_v52 = vmul.f32 %v1316_v9, %v1310_v6  ;;  %v1317_v12 = vmul.f32 %v1316_v9, %v1309_v8  ;;  %v1320_v46 = vmul.f32 %v1316_v9, %v1312_v18  ;;  %v1319_v19 = vmul.f32 %v1316_v9, %v1311_v48  ;;  %v1682_v8 = vld [vmem:[%s1935_s16 + $0x20] sm:$0xff]  ;;  %v1683_v18 = vld [vmem:[%s1935_s16 + $0x28] sm:$0xff] }
 0x43b   : > { %v1324_v14 = vsel %vm1292_vm14, %v1318_v52, 0.0  ;;  %v1321_v16 = vsel %vm1292_vm14, %v1317_v12, 0.0  ;;  %v1330_v21 = vsel %vm1292_vm14, %v1320_v46, 0.0  ;;  %v1327_v13 = vsel %vm1292_vm14, %v1319_v19, 0.0  ;;  %v1684_v52 = vld [vmem:[%s1935_s16 + $0x30] sm:$0xff] }
 0x43c   : > { %1325 = vadd.xlane.f32.xlu1 %v1324_v14  ;;  %1322 = vadd.xlane.f32.xlu0 %v1321_v16 }
 0x440   : > { %1331 = vadd.xlane.f32.xlu1 %v1330_v21  ;;  %1328 = vadd.xlane.f32.xlu0 %v1327_v13 }
 0x4c9   : > { %v1326_v27 = vpop.xlane.xlu1 %1325  ;;  %v1323_v11 = vpop.xlane.xlu0 %1322 }
 0x4ca   : > { %v1338_v7 = vadd.f32 %v1334_v25, %v1326_v27  ;;  %v1337_v10 = vadd.f32 %v1333_v26, %v1323_v11 }
 0x4cc   : > { %v1527_v37 = vmul.f32 -1.442695, %v1338_v7  ;;  %v1526_v38 = vmul.f32 -1.442695, %v1337_v10 }
 0x4cd   : > { %v1332_v39 = vpop.xlane.xlu1 %1331  ;;  %v1329_v23 = vpop.xlane.xlu0 %1328 }
 0x4ce   : > { %1662 = vpow2.f32 %v1527_v37  ;;  %v1340_v40 = vadd.f32 %v1336_v33, %v1332_v39  ;;  %v1339_v41 = vadd.f32 %v1335_v35, %v1329_v23 }
 0x4cf   : > { %1664 = vpow2.f32 %v1526_v38 }
 0x4d0   : > { %v1529_v22 = vmul.f32 -1.442695, %v1340_v40  ;;  %v1528_v42 = vmul.f32 -1.442695, %v1339_v41 }
 0x4d2   : > { %1666 = vpow2.f32 %v1529_v22 }
 0x4d3   : > { %1668 = vpow2.f32 %v1528_v42 }
 0x4d8   : > { %v1663_v3 = vpop.eup %1662 }
 0x4d9   : > { %v1665_v43 = vpop.eup %1664  ;;  %v1354_v44 = vadd.f32 1.0, %v1663_v3 }
 0x4da   : > { %v1353_v45 = vadd.f32 1.0, %v1665_v43 }
 0x4db   : > { %1670 = vrcp.f32 %v1354_v44 }
 0x4dc   : > { %v1667_v36 = vpop.eup %1666  ;;  %1672 = vrcp.f32 %v1353_v45 }
 0x4dd   : > { %v1669_v47 = vpop.eup %1668  ;;  %v1356_v49 = vadd.f32 1.0, %v1667_v36 }
 0x4de   : > { %v1355_v50 = vadd.f32 1.0, %v1669_v47 }
 0x4df   : > { %1674 = vrcp.f32 %v1356_v49 }
 0x4e0   : > { %1676 = vrcp.f32 %v1355_v50 }
 0x4e5   : > { %v1671_v51 = vpop.eup %1670 }
 0x4e6   : > { %v1673_v53 = vpop.eup %1672  ;;  %1372 = vperm.xlu1 %1645, %v1671_v51  }
 0x4e7   : > { %1367 = vperm.xlu0 %1644, %v1673_v53  }
 0x4e9   : > { %v1675_v54 = vpop.eup %1674 }
 0x4ea   : > { %v1677_v55 = vpop.eup %1676 }
 0x4eb   : > { %1382 = vperm.xlu0 %1644, %v1675_v54   ;;  %1377 = vperm.xlu1 %1645, %v1677_v55  }
 0x565   : > { %v1373_v56 = vpop.permute.xlu1 %1372 }
 0x566   : > { %v1387_v57 = vmul.f32 %v2283_v20, %v1373_v56  ;;  %v1388_v58 = vmul.f32 %v2285_v24, %v1373_v56  ;;  %v1368_v59 = vpop.permute.xlu0 %1367 }
 0x567   : > { %v1385_v60 = vmul.f32 %v2279_v15, %v1368_v59  ;;  %v1386_v61 = vmul.f32 %v2281_v17, %v1368_v59 }
 0x568   : > { %v1395_v62 = vadd.f32 %v1678_v28, %v1387_v57  ;;  %v1396_v29 = vadd.f32 %v1679_v63, %v1388_v58 }
 0x569   : > { %v1393_v1 = vadd.f32 %v1680_v0, %v1385_v60  ;;  %v1394_v4 = vadd.f32 %v1681_v2, %v1386_v61 }
 0x56a   : > { %1403 = vst [vmem:[%s340_s26 + $0x10] sm:$0xff] %v1395_v62  ;;  %1404 = vst [vmem:[%s340_s26 + $0x18] sm:$0xff] %v1396_v29  ;;  %v1378_v20 = vpop.permute.xlu1 %1377  ;;  %v1383_v15 = vpop.permute.xlu0 %1382 }
 0x56b   : > { %1401 = vst [vmem:[%s340_s26] sm:$0xff] %v1393_v1  ;;  %1402 = vst [vmem:[%s340_s26 + $0x8] sm:$0xff] %v1394_v4  ;;  %v1389_v17 = vmul.f32 %v2291_v30, %v1378_v20  ;;  %v1390_v24 = vmul.f32 %v2293_v31, %v1378_v20  ;;  %v1391_v5 = vmul.f32 %v2295_v32, %v1383_v15  ;;  %v1685_v30 = vld [vmem:[%s1935_s16 + $0x38] sm:$0xff]  ;;  %s1718_s16 = sshll.u32 %s1795_s21, 4  ;;  %s1719_s16 = int_to_ptr.vmem [resolvable:$false] %s1718_s16 }
 0x56c   : > { %v1392_v6 = vmul.f32 %v2297_v34, %v1383_v15  ;;  %s1720_s17 = scalar_lea.vmem %s1719_s16, 2048  ;;  %p1721_p2 = scmp.lt.s32.totalorder %s2376_s28, %s1719_s16 }
 0x56d   : > { %v1397_v9 = vadd.f32 %v1682_v8, %v1389_v17  ;;  %v1398_v48 = vadd.f32 %v1683_v18, %v1390_v24  ;;  %v1399_v12 = vadd.f32 %v1684_v52, %v1391_v5  ;;  %p1722_p3 = scmp.lt.s32.totalorder %s1720_s17, %s1714_s24 }
 0x56e   : > { %v1400_v14 = vadd.f32 %v1685_v30, %v1392_v6 }
 0x56f   : > { %1405 = vst [vmem:[%s340_s26 + $0x20] sm:$0xff] %v1397_v9  ;;  %1406 = vst [vmem:[%s340_s26 + $0x28] sm:$0xff] %v1398_v48  ;;  %p1723_p4 = por %p1722_p3, %p1721_p2 }
 0x570   : > { %1407 = vst [vmem:[%s340_s26 + $0x30] sm:$0xff] %v1399_v12  ;;  %1408 = vst [vmem:[%s340_s26 + $0x38] sm:$0xff] %v1400_v14 }
 0x571   : > { %p1724_p7 = pnand %p1723_p4, %p1717_p12 }
 0x573   : > { %1727 = shalt.err (!%p1724_p7)
}
 0x574   : > { %s1728_s22 = scalar_lea.hbm %s2370_s29, 1024  ;;  %s1732_s13 = scalar_lea.hbm %s2431_s9, 2048 }
 0x575   : > { %p1729_p8 = scmp.ne.s32.totalorder %s2370_s29, %s1728_s22  ;;  %p1733_p1 = scmp.lt.u32.totalorder %s2370_s29, %s2431_s9 }
 0x576   : > { %p1734_p0 = scmp.lt.u32.totalorder %s1732_s13, %s1728_s22  ;;  %p1736_p6 = scmp.lt.u32.totalorder %s1728_s22, %s2370_s29 }
 0x577   : > { %p1730_p11 = pnand %p1729_p8, %p2459_p9 }
 0x578   : > { %p1735_p5 = por %p1734_p0, %p1733_p1 }
 0x579   : > { %p1731_p13 = pneg %p1730_p11 }
 0x57a   : > { %p1737_p10 = por %p1736_p6, %p1735_p5 }
 0x57c   : > { %p1738_p12 = pnand %p1737_p10, %p1731_p13 }
 0x57e   : > { %1741 = shalt.err (!%p1738_p12)
}
 0x57f   : > { %s1796_s24 = smov 256  }
 0x580   : > { %1585 = dma.vmem_to_hbm [thread:$0]  (%p2459_p9), %s2376_s28, 1024, %s2370_s29, %s2380_s14, %s1796_s24, %s1796_s24, %s1786_s23  }
 0x581 PF: > { %p1597_p2 = scmp.ge.s32.totalorder %s1780_s12, 2  ;;  %s1438_s16 = sand.u32 1, %s1768_s30  }
 0x582   : > { %p2460_p3 = scmp.ne.s32.totalorder %s2446_s20, 0  ;;  %s1439_s17 = scalar_lea.sflag [#allocation5], %s1438_s16 }
 0x584   : > { %p1592_p4 = pnand %p1597_p2, %p2460_p3 }
 0x586   : > { %1763 = dma.done.wait (!%p1592_p4), %s1439_s17, 1024  }
 0x587   : > { %1765 = vsyncadd (!%p1592_p4), %s1439_s17, 4294966272  ;;  %p20_p7 = scmp.ge.s32.totalorder %s1872_s15, 4   ;;  %s2461_s30 = smov %s1772_s10 }
 0x588   : > { %s2462_s10 = smov %s1776_s11  ;;  %s2463_s11 = smov %s1883_s18 }
 0x589   : > { %s2464_s12 = smov %s1872_s15  ;;  %22 = sbr.rel (!%p20_p7) target bundleno = 4 (0x4), region = 96 }
 0x590   :  { %1444 = vsyncpa [#allocation4], 1 }
 0x591   :  { %1446 = vsyncpa [#allocation4 + $0x1], 1 }
 0x592   :  { %1447 = vsyncpa [#allocation5], 1 }
 0x593   :  { %1449 = vsyncpa [#allocation5 + $0x1], 1 }

</bundles_post_ra>
